<compile_context>
chip_gen: v6e
topology: v6e:2x2x1
jax: 0.10.0
libtpu: 0.0.40
codegen_flags: <defaults>
</compile_context>

<pallas_src>
import functools

import jax
import jax.numpy as jnp
from jax.experimental import pallas as pl
from jax.experimental.pallas import tpu as pltpu


def _round_up(x, m):
    return (x + m - 1) // m * m


# ------------------------------ Pallas kernel -------------------------------

def _layer_kernel(a_ref, e_ref, sum_in_ref, e_out_ref, sum_out_ref):
    """One (row-tile, K-tile) step of a LightGCN layer.

    e_out[i]   = sum_k A[i, k] @ E[k]      (f32 accumulation directly in e_out)
    sum_out[i] = sum_in[i] + e_out[i]      (written once, at the last K step)
    """
    k = pl.program_id(1)
    tk = a_ref.shape[1]

    @pl.when(k == 0)
    def _():
        e_out_ref[...] = jnp.zeros_like(e_out_ref)

    k_off = pl.multiple_of(k * tk, tk)
    e_blk = e_ref[pl.ds(k_off, tk), :]            # (tk, Dp) bf16 from resident E
    e_out_ref[...] += jnp.dot(a_ref[...], e_blk,
                              preferred_element_type=jnp.float32)

    @pl.when(k == pl.num_programs(1) - 1)
    def _():
        sum_out_ref[...] = sum_in_ref[...] + e_out_ref[...]


def propagate_accumulate(adj_bf16, emb_bf16, layer_sum, *, tm=256):
    """Fused (A @ E, layer_sum + A @ E) for one LightGCN layer.

    adj_bf16 : (N, N)  bf16, symmetric-normalized (zero-padded rows/cols)
    emb_bf16 : (N, Dp) bf16 current-layer embeddings (Dp multiple of 128)
    layer_sum: (N, Dp) f32 running sum over layers (updated in place)
    """
    n, dp = emb_bf16.shape
    assert adj_bf16.shape == (n, n)
    assert layer_sum.shape == (n, dp) and layer_sum.dtype == jnp.float32
    assert dp % 128 == 0, "pad latent_dim to a multiple of 128 (lane-dense)"

    tm = min(tm, n)
    tk = 512 if n % 512 == 0 else 256             # lane axis: multiple of 128
    tk = min(tk, n)
    assert n % tm == 0 and n % tk == 0

    grid = (n // tm, n // tk)                     # rows: parallel, K: arbitrary

    e_out, sum_out = pl.pallas_call(
        _layer_kernel,
        out_shape=(jax.ShapeDtypeStruct((n, dp), jnp.float32),
                   jax.ShapeDtypeStruct((n, dp), jnp.float32)),
        grid_spec=pltpu.PrefetchScalarGridSpec(
            num_scalar_prefetch=0,
            grid=grid,
            in_specs=[
                pl.BlockSpec((tm, tk), lambda i, k: (i, k)),  # A tile (bf16 stream)
                pl.BlockSpec((n, dp), lambda i, k: (0, 0)),   # E: resident in VMEM
                pl.BlockSpec((tm, dp), lambda i, k: (i, 0)),  # layer-sum in
            ],
            out_specs=(
                pl.BlockSpec((tm, dp), lambda i, k: (i, 0)),  # e_out (acc across K)
                pl.BlockSpec((tm, dp), lambda i, k: (i, 0)),  # layer-sum out
            ),
        ),
        # layer_sum (input index 2) is updated in place as output index 1.
        input_output_aliases={2: 1},
        compiler_params=pltpu.CompilerParams(
            dimension_semantics=("parallel", "arbitrary"),
            # ~1.5 MiB actually used at demo shapes; explicit cap keeps us well
            # inside v7x's 64 MiB physical VMEM while allowing deep pipelining.
            vmem_limit_bytes=32 * 1024 * 1024,
        ),
    )(adj_bf16, emb_bf16, layer_sum)
    return e_out, sum_out


# ---------------------- jitted multi-layer propagation ----------------------

@functools.partial(jax.jit, static_argnames=("n_layers",))
def _lightgcn_light_out(graph_bf16, user_emb, item_emb, *, n_layers):
    """Returns the padded (N_pad, D_pad) mean-over-layers embedding table."""
    n_pad = graph_bf16.shape[0]
    all_emb = jnp.concatenate([user_emb, item_emb], axis=0)   # (N, D) f32
    n, d = all_emb.shape
    d_pad = _round_up(d, 128)

    all_emb_pad = jnp.zeros((n_pad, d_pad), jnp.float32).at[:n, :d].set(all_emb)

    emb = all_emb_pad                      # E_0 (f32 carry)
    layer_sum = all_emb_pad                # layer-0 contribution
    for _ in range(n_layers):
        emb, layer_sum = propagate_accumulate(
            graph_bf16, emb.astype(jnp.bfloat16), layer_sum)
    return layer_sum * (1.0 / (n_layers + 1))


# ------------------------------ LightGCN model ------------------------------

class LightGCNPallas:
    """JAX/Pallas re-implementation of LightGCN.forward (inference path).

    Matches torch semantics of `computer()`:
      all_emb = cat(user_emb, item_emb)
      for layer in range(n_layers): all_emb = Graph @ all_emb
      light_out = mean over {layer 0 .. n_layers} embeddings
      users, items = split(light_out, [num_users, num_items])
    forward(users, items) gathers rows (or returns all when None).
    """

    def __init__(self, num_users, num_items, latent_dim, n_layers, key):
        self.num_users = num_users
        self.num_items = num_items
        self.latent_dim = latent_dim
        self.n_layers = n_layers

        k_u, k_i, k_g = jax.random.split(key, 3)
        # nn.init.normal_(..., std=0.1)
        self.user_emb = (0.1 * jax.random.normal(
            k_u, (num_users, latent_dim))).astype(jnp.float32)
        self.item_emb = (0.1 * jax.random.normal(
            k_i, (num_items, latent_dim))).astype(jnp.float32)

        # Deterministic synthetic bipartite interaction graph, then standard
        # LightGCN symmetric normalization  D^{-1/2} A D^{-1/2}.
        r = (jax.random.uniform(k_g, (num_users, num_items)) < 0.25
             ).astype(jnp.float32)
        n = num_users + num_items
        adj = jnp.zeros((n, n), jnp.float32)
        adj = adj.at[:num_users, num_users:].set(r)
        adj = adj.at[num_users:, :num_users].set(r.T)
        deg = jnp.sum(adj, axis=1)
        d_inv_sqrt = jnp.where(deg > 0, 1.0 / jnp.sqrt(deg), 0.0)
        graph = adj * d_inv_sqrt[:, None] * d_inv_sqrt[None, :]

        # Pad nodes to a multiple of 256 (row-tile / MXU aligned) and store the
        # adjacency once in bf16 (halves HBM traffic, doubles MXU rate).
        self.n_pad = _round_up(n, 256)
        graph_pad = jnp.zeros((self.n_pad, self.n_pad), jnp.float32)
        graph_pad = graph_pad.at[:n, :n].set(graph)
        self.graph_bf16 = graph_pad.astype(jnp.bfloat16)

        # TODO(synk): sparse-dropout (__dropout_x) and A_split folding are
        # training/layout-only variants; eval-mode forward() uses the raw Graph.

    def computer(self):
        light_pad = _lightgcn_light_out(
            self.graph_bf16, self.user_emb, self.item_emb,
            n_layers=self.n_layers)
        n = self.num_users + self.num_items
        light = light_pad[:n, : self.latent_dim]
        users = light[: self.num_users]
        items = light[self.num_users:]
        return users, items

    def forward(self, users=None, items=None):
        all_users, all_items = self.computer()
        users_emb = all_users if users is None else all_users[users]
        items_emb = all_items if items is None else all_items[items]
        return users_emb, items_emb


# --------------------------- reference (pure JAX) ----------------------------

def reference_forward(model, users=None, items=None):
    """Pure-JAX mirror using the same bf16 edge weights / bf16 matmul operands."""
    n = model.num_users + model.num_items
    a = model.graph_bf16[:n, :n].astype(jnp.float32)
    all_emb = jnp.concatenate([model.user_emb, model.item_emb], axis=0)
    emb = all_emb
    layer_sum = all_emb
    for _ in range(model.n_layers):
        emb = jnp.dot(a, emb.astype(jnp.bfloat16).astype(jnp.float32),
                      precision=jax.lax.Precision.HIGHEST)
        layer_sum = layer_sum + emb
    light_out = layer_sum / (model.n_layers + 1)
    all_users = light_out[: model.num_users]
    all_items = light_out[model.num_users:]
    u = all_users if users is None else all_users[users]
    i = all_items if items is None else all_items[items]
    return u, i


# ----------------------------------- main ------------------------------------

if __name__ == "__main__":
    key = jax.random.PRNGKey(0)

    # Small demo shapes: 190 users + 290 items = 480 nodes (padded to 512),
    # latent_dim 64 (padded to 128 lanes), 3 propagation layers.
    num_users, num_items, latent_dim, n_layers = 190, 290, 64, 3
    model = LightGCNPallas(num_users, num_items, latent_dim, n_layers, key)

    users_idx = jnp.array([0, 7, 63, 150], dtype=jnp.int32)
    items_idx = jnp.array([3, 9, 128, 289], dtype=jnp.int32)

    users_emb, items_emb = model.forward(users_idx, items_idx)
    jax.block_until_ready((users_emb, items_emb))

    u_ref, i_ref = reference_forward(model, users_idx, items_idx)
    assert users_emb.shape == (4, latent_dim)
    assert items_emb.shape == (4, latent_dim)
    assert jnp.allclose(users_emb, u_ref, atol=1e-4, rtol=1e-3), (
        float(jnp.max(jnp.abs(users_emb - u_ref))))
    assert jnp.allclose(items_emb, i_ref, atol=1e-4, rtol=1e-3), (
        float(jnp.max(jnp.abs(items_emb - i_ref))))

    # "return all embeddings" path (users=None, items=None).
    all_u, all_i = model.forward()
    jax.block_until_ready((all_u, all_i))
    assert all_u.shape == (num_users, latent_dim)
    assert all_i.shape == (num_items, latent_dim)

    print("KERNEL_OK")
</pallas_src>

<mosaic_0001>
module attributes {stable_mosaic.version = 11 : i64} {
  func.func @_layer_kernel(%arg0: i32, %arg1: i32, %arg2: memref<256x512xbf16, #tpu.memory_space<vmem>>, %arg3: memref<512x128xbf16, #tpu.memory_space<vmem>>, %arg4: memref<256x128xf32, #tpu.memory_space<vmem>>, %arg5: memref<256x128xf32, #tpu.memory_space<vmem>>, %arg6: memref<256x128xf32, #tpu.memory_space<vmem>>) attributes {dimension_semantics = [#tpu.dimension_semantics<parallel>, #tpu.dimension_semantics<arbitrary>], iteration_bounds = array<i64: 2, 1>, scalar_prefetch = 0 : i64, scratch_operands = 0 : i64, tpu.core_type = #tpu.core_type<tc>, window_params = [{transform_indices = @transform_0, window_bounds = array<i64: 256, 512>}, {pipeline_mode = #tpu.pipeline_mode<synchronous>, transform_indices = @transform_1, window_bounds = array<i64: 512, 128>}, {transform_indices = @transform_2, window_bounds = array<i64: 256, 128>}, {transform_indices = @transform_3, window_bounds = array<i64: 256, 128>}, {transform_indices = @transform_4, window_bounds = array<i64: 256, 128>}]} {
    %c0_i32 = arith.constant 0 : i32
    %0 = arith.cmpi eq, %arg1, %c0_i32 : i32
    %1 = arith.extui %0 : i1 to i32
    %c0_i32_0 = arith.constant 0 : i32
    %2 = arith.cmpi ne, %1, %c0_i32_0 : i32
    scf.if %2 {
      %cst_9 = arith.constant 0.000000e+00 : f32
      %15 = vector.broadcast %cst_9 : f32 to vector<256x128xf32>
      %c0_10 = arith.constant 0 : index
      %c0_11 = arith.constant 0 : index
      %16 = vector.load %arg5[%c0_10, %c0_11] : memref<256x128xf32, #tpu.memory_space<vmem>>, vector<256x128xf32>
      tpu.vector_store %arg5[%c0_10, %c0_11], %15 {strides = array<i32>} : memref<256x128xf32, #tpu.memory_space<vmem>>, vector<256x128xf32>,
    } else {
    }
    %c512_i32 = arith.constant 512 : i32
    %3 = arith.muli %arg1, %c512_i32 : i32
    %4 = tpu.assume_multiple %3, 512 : i32
    %5 = arith.index_cast %4 : i32 to index
    %c0 = arith.constant 0 : index
    %6 = vector.load %arg3[%5, %c0] : memref<512x128xbf16, #tpu.memory_space<vmem>>, vector<512x128xbf16>
    %c0_1 = arith.constant 0 : index
    %c0_2 = arith.constant 0 : index
    %7 = vector.load %arg5[%c0_1, %c0_2] : memref<256x128xf32, #tpu.memory_space<vmem>>, vector<256x128xf32>
    %c0_3 = arith.constant 0 : index
    %c0_4 = arith.constant 0 : index
    %8 = vector.load %arg2[%c0_3, %c0_4] : memref<256x512xbf16, #tpu.memory_space<vmem>>, vector<256x512xbf16>
    %cst = arith.constant dense<0.000000e+00> : vector<256x128xf32>
    %9 = tpu.matmul %8, %6, %cst {dimension_numbers = #tpu.dot_dimension_numbers<[1], [0], [0], [1], [0, 0, 1, 1], [], []>} : vector<256x512xbf16>, vector<512x128xbf16>, vector<256x128xf32> -> vector<256x128xf32>
    %10 = arith.addf %7, %9 : vector<256x128xf32>
    %c0_5 = arith.constant 0 : index
    %c0_6 = arith.constant 0 : index
    %11 = vector.load %arg5[%c0_5, %c0_6] : memref<256x128xf32, #tpu.memory_space<vmem>>, vector<256x128xf32>
    tpu.vector_store %arg5[%c0_5, %c0_6], %10 {strides = array<i32>} : memref<256x128xf32, #tpu.memory_space<vmem>>, vector<256x128xf32>,
    %c0_i32_7 = arith.constant 0 : i32
    %12 = arith.cmpi eq, %arg1, %c0_i32_7 : i32
    %13 = arith.extui %12 : i1 to i32
    %c0_i32_8 = arith.constant 0 : i32
    %14 = arith.cmpi ne, %13, %c0_i32_8 : i32
    scf.if %14 {
      %c0_9 = arith.constant 0 : index
      %c0_10 = arith.constant 0 : index
      %15 = vector.load %arg4[%c0_9, %c0_10] : memref<256x128xf32, #tpu.memory_space<vmem>>, vector<256x128xf32>
      %c0_11 = arith.constant 0 : index
      %c0_12 = arith.constant 0 : index
      %16 = vector.load %arg5[%c0_11, %c0_12] : memref<256x128xf32, #tpu.memory_space<vmem>>, vector<256x128xf32>
      %17 = arith.addf %15, %16 : vector<256x128xf32>
      %c0_13 = arith.constant 0 : index
      %c0_14 = arith.constant 0 : index
      %18 = vector.load %arg6[%c0_13, %c0_14] : memref<256x128xf32, #tpu.memory_space<vmem>>, vector<256x128xf32>
      tpu.vector_store %arg6[%c0_13, %c0_14], %17 {strides = array<i32>} : memref<256x128xf32, #tpu.memory_space<vmem>>, vector<256x128xf32>,
    } else {
    }
    return
  }
  func.func @transform_0(%arg0: i32, %arg1: i32) -> (i32, i32) {
    %c0_i32 = arith.constant 0 : i32
    return %arg0, %arg1 : i32, i32
  }
  func.func @transform_1(%arg0: i32, %arg1: i32) -> (i32, i32) {
    %c0_i32 = arith.constant 0 : i32
    %c0_i32_0 = arith.constant 0 : i32
    %c0_i32_1 = arith.constant 0 : i32
    return %c0_i32, %c0_i32_0 : i32, i32
  }
  func.func @transform_2(%arg0: i32, %arg1: i32) -> (i32, i32) {
    %c0_i32 = arith.constant 0 : i32
    %c0_i32_0 = arith.constant 0 : i32
    return %arg0, %c0_i32 : i32, i32
  }
  func.func @transform_3(%arg0: i32, %arg1: i32) -> (i32, i32) {
    %c0_i32 = arith.constant 0 : i32
    %c0_i32_0 = arith.constant 0 : i32
    return %arg0, %c0_i32 : i32, i32
  }
  func.func @transform_4(%arg0: i32, %arg1: i32) -> (i32, i32) {
    %c0_i32 = arith.constant 0 : i32
    %c0_i32_0 = arith.constant 0 : i32
    return %arg0, %c0_i32 : i32, i32
  }
}

module attributes {stable_mosaic.version = 11 : i64} {
  func.func @_layer_kernel(%arg0: i32, %arg1: i32, %arg2: memref<256x512xbf16, #tpu.memory_space<vmem>>, %arg3: memref<512x128xbf16, #tpu.memory_space<vmem>>, %arg4: memref<256x128xf32, #tpu.memory_space<vmem>>, %arg5: memref<256x128xf32, #tpu.memory_space<vmem>>, %arg6: memref<256x128xf32, #tpu.memory_space<vmem>>) attributes {dimension_semantics = [#tpu.dimension_semantics<parallel>, #tpu.dimension_semantics<arbitrary>], iteration_bounds = array<i64: 2, 1>, scalar_prefetch = 0 : i64, scratch_operands = 0 : i64, tpu.core_type = #tpu.core_type<tc>, window_params = [{transform_indices = @transform_0, window_bounds = array<i64: 256, 512>}, {pipeline_mode = #tpu.pipeline_mode<synchronous>, transform_indices = @transform_1, window_bounds = array<i64: 512, 128>}, {transform_indices = @transform_2, window_bounds = array<i64: 256, 128>}, {transform_indices = @transform_3, window_bounds = array<i64: 256, 128>}, {transform_indices = @transform_4, window_bounds = array<i64: 256, 128>}]} {
    %c0_i32 = arith.constant 0 : i32
    %0 = arith.cmpi eq, %arg1, %c0_i32 : i32
    %1 = arith.extui %0 : i1 to i32
    %c0_i32_0 = arith.constant 0 : i32
    %2 = arith.cmpi ne, %1, %c0_i32_0 : i32
    scf.if %2 {
      %cst_9 = arith.constant 0.000000e+00 : f32
      %15 = vector.broadcast %cst_9 : f32 to vector<256x128xf32>
      %c0_10 = arith.constant 0 : index
      %c0_11 = arith.constant 0 : index
      %16 = vector.load %arg5[%c0_10, %c0_11] : memref<256x128xf32, #tpu.memory_space<vmem>>, vector<256x128xf32>
      tpu.vector_store %arg5[%c0_10, %c0_11], %15 {strides = array<i32>} : memref<256x128xf32, #tpu.memory_space<vmem>>, vector<256x128xf32>,
    } else {
    }
    %c512_i32 = arith.constant 512 : i32
    %3 = arith.muli %arg1, %c512_i32 : i32
    %4 = tpu.assume_multiple %3, 512 : i32
    %5 = arith.index_cast %4 : i32 to index
    %c0 = arith.constant 0 : index
    %6 = vector.load %arg3[%5, %c0] : memref<512x128xbf16, #tpu.memory_space<vmem>>, vector<512x128xbf16>
    %c0_1 = arith.constant 0 : index
    %c0_2 = arith.constant 0 : index
    %7 = vector.load %arg5[%c0_1, %c0_2] : memref<256x128xf32, #tpu.memory_space<vmem>>, vector<256x128xf32>
    %c0_3 = arith.constant 0 : index
    %c0_4 = arith.constant 0 : index
    %8 = vector.load %arg2[%c0_3, %c0_4] : memref<256x512xbf16, #tpu.memory_space<vmem>>, vector<256x512xbf16>
    %cst = arith.constant dense<0.000000e+00> : vector<256x128xf32>
    %9 = tpu.matmul %8, %6, %cst {dimension_numbers = #tpu.dot_dimension_numbers<[1], [0], [0], [1], [0, 0, 1, 1], [], []>} : vector<256x512xbf16>, vector<512x128xbf16>, vector<256x128xf32> -> vector<256x128xf32>
    %10 = arith.addf %7, %9 : vector<256x128xf32>
    %c0_5 = arith.constant 0 : index
    %c0_6 = arith.constant 0 : index
    %11 = vector.load %arg5[%c0_5, %c0_6] : memref<256x128xf32, #tpu.memory_space<vmem>>, vector<256x128xf32>
    tpu.vector_store %arg5[%c0_5, %c0_6], %10 {strides = array<i32>} : memref<256x128xf32, #tpu.memory_space<vmem>>, vector<256x128xf32>,
    %c0_i32_7 = arith.constant 0 : i32
    %12 = arith.cmpi eq, %arg1, %c0_i32_7 : i32
    %13 = arith.extui %12 : i1 to i32
    %c0_i32_8 = arith.constant 0 : i32
    %14 = arith.cmpi ne, %13, %c0_i32_8 : i32
    scf.if %14 {
      %c0_9 = arith.constant 0 : index
      %c0_10 = arith.constant 0 : index
      %15 = vector.load %arg4[%c0_9, %c0_10] : memref<256x128xf32, #tpu.memory_space<vmem>>, vector<256x128xf32>
      %c0_11 = arith.constant 0 : index
      %c0_12 = arith.constant 0 : index
      %16 = vector.load %arg5[%c0_11, %c0_12] : memref<256x128xf32, #tpu.memory_space<vmem>>, vector<256x128xf32>
      %17 = arith.addf %15, %16 : vector<256x128xf32>
      %c0_13 = arith.constant 0 : index
      %c0_14 = arith.constant 0 : index
      %18 = vector.load %arg6[%c0_13, %c0_14] : memref<256x128xf32, #tpu.memory_space<vmem>>, vector<256x128xf32>
      tpu.vector_store %arg6[%c0_13, %c0_14], %17 {strides = array<i32>} : memref<256x128xf32, #tpu.memory_space<vmem>>, vector<256x128xf32>,
    } else {
    }
    return
  }
  func.func @transform_0(%arg0: i32, %arg1: i32) -> (i32, i32) {
    %c0_i32 = arith.constant 0 : i32
    return %arg0, %arg1 : i32, i32
  }
  func.func @transform_1(%arg0: i32, %arg1: i32) -> (i32, i32) {
    %c0_i32 = arith.constant 0 : i32
    %c0_i32_0 = arith.constant 0 : i32
    %c0_i32_1 = arith.constant 0 : i32
    return %c0_i32, %c0_i32_0 : i32, i32
  }
  func.func @transform_2(%arg0: i32, %arg1: i32) -> (i32, i32) {
    %c0_i32 = arith.constant 0 : i32
    %c0_i32_0 = arith.constant 0 : i32
    return %arg0, %c0_i32 : i32, i32
  }
  func.func @transform_3(%arg0: i32, %arg1: i32) -> (i32, i32) {
    %c0_i32 = arith.constant 0 : i32
    %c0_i32_0 = arith.constant 0 : i32
    return %arg0, %c0_i32 : i32, i32
  }
  func.func @transform_4(%arg0: i32, %arg1: i32) -> (i32, i32) {
    %c0_i32 = arith.constant 0 : i32
    %c0_i32_0 = arith.constant 0 : i32
    return %arg0, %c0_i32 : i32, i32
  }
}

</mosaic_0001>

<bundles_post_ra>
// kernel: _lightgcn_light_out.3
= control target key start
LH: loop header
LB: loop body
LE: loop exit
PB: predicated region body
PF: predicated region fallthrough
CT: control target
= control target key end

     0   :  { %s2157_s15 = smov 0   ;;  %s2159_s16 = smov 0   ;;  %s2559_s0 = inlined_call_operand.vmem [shape: bf16[512,512], index: 0, kind: input, shape index: {}]   ;;  %s2560_s1 = inlined_call_operand.vmem [shape: bf16[512,128], index: 1, kind: input, shape index: {}]   ;;  %s2561_s2 = inlined_call_operand.vmem [shape: f32[512,128], index: 2, kind: input, shape index: {}, may-alias: {2,4}]   ;;  %s2562_s3 = inlined_call_operand.vmem [shape: f32[512,128], index: 3, kind: output, shape index: {0}]   ;;  %s2563_s4 = inlined_call_operand.vmem [shape: f32[512,128], index: 4, kind: output, shape index: {1}, may-alias: {2,4}]  }
   0x1   :  { %s2161_s17 = smov 0  }
   0x2 LB: > { %s27_s18 = sadd.s32 1, %s2126_s16  ;;  %p1622_p0 = scmp.ge.s32.totalorder %s2130_s17, 1  ;;  %s2130_s17 = sphi %s2161_s17, %s15_s17   ;;  %s2126_s16 = sphi %s2159_s16, %s2565_s16   ;;  %s2122_s15 = sphi %s2157_s15, %s2564_s15  }
   0x3   : > { %p29_p1 = scmp.ge.s32.totalorder %s27_s18, 2  ;;  %p197_p2 = scmp.lt.s32.totalorder %s2130_s17, 3 }
   0x5   : > { %s2567_s18 = smov (%p29_p1, %s27_s18), 0  ;;  %p198_p3 = pnand %p1622_p0, %p197_p2 }
   0x6   : > { %s1623_s29 = sshll.u32 (!%p198_p3), %s2122_s15, 5 }
   0x7   : > { %201 = sbr.rel (%p198_p3) target bundleno = 373 (0x175), region = 32  ;;  %p240_p4 = scmp.lt.s32.totalorder (!%p198_p3), %s1623_s29, 63 }
   0xc   : > { %v1980_v0 = vld [vmem:[%s2560_s1 + $0x78] sm:$0xff]   ;;  %v1984_v4 = vld [vmem:[%s2560_s1 + $0x70] sm:$0xff]   ;;  %v1988_v8 = vld [vmem:[%s2560_s1 + $0x68] sm:$0xff]   ;;  %s2569_s29 = smov (!%p240_p4, %s1623_s29), 63 }
   0xd   : > { %v1981_v1 = vld [vmem:[%s2560_s1 + $0xf8] sm:$0xff]   ;;  %1731 = vmatprep.subr.bf16.mxu0 %v1980_v0  ;;  %v1985_v5 = vld [vmem:[%s2560_s1 + $0xf0] sm:$0xff]   ;;  %v1989_v9 = vld [vmem:[%s2560_s1 + $0xe8] sm:$0xff]   ;;  %s1730_s30 = sshll.u32 %s2569_s29, 4  ;;  %s2347_s21 = sshll.u32 %s2569_s29, 3 }
   0xe   : > { %v1982_v2 = vld [vmem:[%s2560_s1 + $0x38] sm:$0xff]   ;;  %1843 = vmatprep.subr.bf16.mxu1 %v1981_v1  ;;  %v1986_v6 = vld [vmem:[%s2560_s1 + $0x30] sm:$0xff]   ;;  %v1990_v10 = vld [vmem:[%s2560_s1 + $0x28] sm:$0xff]   ;;  %s2274_s12 = scalar_lea.vmem %s2559_s0, %s1730_s30  ;;  %s2353_s24 = scalar_lea.vmem %s2561_s2, %s2347_s21 }
   0xf   : > { %v1983_v3 = vld [vmem:[%s2560_s1 + $0xb8] sm:$0xff]   ;;  %1732 = vmatpush3.bf16.msra.mxu0 %v1982_v2  ;;  %v1987_v7 = vld [vmem:[%s2560_s1 + $0xb0] sm:$0xff]   ;;  %v1991_v11 = vld [vmem:[%s2560_s1 + $0xa8] sm:$0xff]   ;;  %s2360_s26 = scalar_lea.vmem %s2562_s3, %s2347_s21  ;;  %s2446_s30 = scalar_lea.vmem %s2563_s4, %s2347_s21 }
  0x10   : > { %1844 = vmatpush3.bf16.msra.mxu1 %v1983_v3  ;;  %1733 = vmatprep.subr.bf16.mxu0 %v1984_v4  ;;  %v1992_v12 = vld [vmem:[%s2560_s1 + $0x60] sm:$0xff]   ;;  %v1996_v16 = vld [vmem:[%s2560_s1 + $0x58] sm:$0xff]   ;;  %v2000_v20 = vld [vmem:[%s2560_s1 + $0x50] sm:$0xff]  }
  0x11   : > { %1845 = vmatprep.subr.bf16.mxu1 %v1985_v5  ;;  %v1993_v13 = vld [vmem:[%s2560_s1 + $0xe0] sm:$0xff]   ;;  %v1997_v17 = vld [vmem:[%s2560_s1 + $0xd8] sm:$0xff]   ;;  %v2001_v21 = vld [vmem:[%s2560_s1 + $0xd0] sm:$0xff]  }
  0x12   : > { %v1994_v14 = vld [vmem:[%s2560_s1 + $0x20] sm:$0xff]   ;;  %v1998_v18 = vld [vmem:[%s2560_s1 + $0x18] sm:$0xff]   ;;  %v2002_v22 = vld [vmem:[%s2560_s1 + $0x10] sm:$0xff]  }
  0x13   : > { %1734 = vmatpush3.bf16.msra.mxu0 %v1986_v6  ;;  %v1995_v15 = vld [vmem:[%s2560_s1 + $0xa0] sm:$0xff]   ;;  %v1999_v19 = vld [vmem:[%s2560_s1 + $0x98] sm:$0xff]   ;;  %v2003_v23 = vld [vmem:[%s2560_s1 + $0x90] sm:$0xff]  }
  0x14   : > { %1846 = vmatpush3.bf16.msra.mxu1 %v1987_v7  ;;  %1735 = vmatprep.subr.bf16.mxu0 %v1988_v8  ;;  %v2004_v24 = vld [vmem:[%s2560_s1 + $0x48] sm:$0xff]   ;;  %v2008_v28 = vld [vmem:[%s2560_s1 + $0x40] sm:$0xff]  }
  0x15   : > { %1847 = vmatprep.subr.bf16.mxu1 %v1989_v9  ;;  %v2005_v25 = vld [vmem:[%s2560_s1 + $0xc8] sm:$0xff]   ;;  %v2009_v29 = vld [vmem:[%s2560_s1 + $0xc0] sm:$0xff]  }
  0x16   : > { %v2006_v26 = vld [vmem:[%s2560_s1 + $0x8] sm:$0xff]   ;;  %v2010_v30 = vld [vmem:[%s2560_s1] sm:$0xff]  }
  0x17   : > { %1736 = vmatpush3.bf16.msra.mxu0 %v1990_v10  ;;  %v2007_v27 = vld [vmem:[%s2560_s1 + $0x88] sm:$0xff]   ;;  %v2011_v31 = vld [vmem:[%s2560_s1 + $0x80] sm:$0xff]  }
  0x18   : > { %1848 = vmatpush3.bf16.msra.mxu1 %v1991_v11  ;;  %1737 = vmatprep.subr.bf16.mxu0 %v1992_v12  ;;  %v2012_v32 = vld [vmem:[%s2274_s12] ss:$16 sps:$4 sm:$0xff]   ;;  %v2014_v33 = vld [vmem:[%s2274_s12 + $0x4] ss:$16 sps:$4 sm:$0xff]   ;;  %v2015_v34 = vld [vmem:[%s2274_s12 + $0x8] ss:$16 sps:$4 sm:$0xff]  }
  0x19   : > { %1849 = vmatprep.subr.bf16.mxu1 %v1993_v13  ;;  %v2017_v35 = vld [vmem:[%s2274_s12 + $0xc] ss:$16 sps:$4 sm:$0xff]   ;;  %1014 = vmatprep.mubr.bf16.mxu0 %v2014_v33  ;;  %v2018_v36 = vld [vmem:[%s2274_s12 + $0x24] ss:$16 sps:$4 sm:$0xff]   ;;  %v2022_v38 = vld [vmem:[%s2274_s12 + $0x20] ss:$16 sps:$4 sm:$0xff]  }
  0x1a   : > { %1175 = vmatprep.mubr.bf16.mxu1 %v2017_v35  ;;  %v2020_v37 = vld [vmem:[%s2274_s12 + $0x2c] ss:$16 sps:$4 sm:$0xff]   ;;  %v2023_v39 = vld [vmem:[%s2274_s12 + $0x28] ss:$16 sps:$4 sm:$0xff]   ;;  %v2024_v40 = vld [vmem:[%s2274_s12 + $0x44] ss:$16 sps:$4 sm:$0xff]  }
  0x1b   : > { %1738 = vmatpush3.bf16.msra.mxu0 %v1994_v14  ;;  %v2026_v41 = vld [vmem:[%s2274_s12 + $0x4c] ss:$16 sps:$4 sm:$0xff]   ;;  %v2028_v42 = vld [vmem:[%s2274_s12 + $0x40] ss:$16 sps:$4 sm:$0xff]   ;;  %v2029_v43 = vld [vmem:[%s2274_s12 + $0x48] ss:$16 sps:$4 sm:$0xff]  }
  0x1c   : > { %1850 = vmatpush3.bf16.msra.mxu1 %v1995_v15  ;;  %1739 = vmatprep.subr.bf16.mxu0 %v1996_v16  ;;  %v2030_v44 = vld [vmem:[%s2274_s12 + $0x64] ss:$16 sps:$4 sm:$0xff]   ;;  %v2032_v45 = vld [vmem:[%s2274_s12 + $0x6c] ss:$16 sps:$4 sm:$0xff]   ;;  %v2034_v46 = vld [vmem:[%s2274_s12 + $0x60] ss:$16 sps:$4 sm:$0xff]  }
  0x1d   : > { %1851 = vmatprep.subr.bf16.mxu1 %v1997_v17  ;;  %v2035_v47 = vld [vmem:[%s2274_s12 + $0x68] ss:$16 sps:$4 sm:$0xff]   ;;  %v2036_v48 = vld [vmem:[%s2274_s12 + $0x84] ss:$16 sps:$4 sm:$0xff]   ;;  %v2038_v49 = vld [vmem:[%s2274_s12 + $0x8c] ss:$16 sps:$4 sm:$0xff]  }
  0x1e   : > { %v2040_v50 = vld [vmem:[%s2274_s12 + $0x80] ss:$16 sps:$4 sm:$0xff]   ;;  %v2041_v51 = vld [vmem:[%s2274_s12 + $0x88] ss:$16 sps:$4 sm:$0xff]   ;;  %v2042_v52 = vld [vmem:[%s2274_s12 + $0xa4] ss:$16 sps:$4 sm:$0xff]  }
  0x1f   : > { %1740 = vmatpush3.bf16.msra.mxu0 %v1998_v18  ;;  %v2044_v53 = vld [vmem:[%s2274_s12 + $0xac] ss:$16 sps:$4 sm:$0xff]   ;;  %v2046_v54 = vld [vmem:[%s2274_s12 + $0xa0] ss:$16 sps:$4 sm:$0xff]   ;;  %v2047_v55 = vld [vmem:[%s2274_s12 + $0xa8] ss:$16 sps:$4 sm:$0xff]  }
  0x20   : > { %1852 = vmatpush3.bf16.msra.mxu1 %v1999_v19  ;;  %1741 = vmatprep.subr.bf16.mxu0 %v2000_v20  ;;  %v2048_v56 = vld [vmem:[%s2274_s12 + $0xc4] ss:$16 sps:$4 sm:$0xff]   ;;  %v2050_v57 = vld [vmem:[%s2274_s12 + $0xcc] ss:$16 sps:$4 sm:$0xff]   ;;  %v2052_v58 = vld [vmem:[%s2274_s12 + $0xc0] ss:$16 sps:$4 sm:$0xff]  }
  0x21   : > { %1853 = vmatprep.subr.bf16.mxu1 %v2001_v21  ;;  %v2053_v59 = vld [vmem:[%s2274_s12 + $0xc8] ss:$16 sps:$4 sm:$0xff]   ;;  %v2054_v60 = vld [vmem:[%s2274_s12 + $0xe4] ss:$16 sps:$4 sm:$0xff]   ;;  %v2056_v61 = vld [vmem:[%s2274_s12 + $0xec] ss:$16 sps:$4 sm:$0xff]  }
  0x22   : > { %v2058_v62 = vld [vmem:[%s2274_s12 + $0xe0] ss:$16 sps:$4 sm:$0xff]   ;;  %v2059_v63 = vld [vmem:[%s2274_s12 + $0xe8] ss:$16 sps:$4 sm:$0xff]   ;;  %v2060_v0 = vld [vmem:[%s2274_s12 + $0x104] ss:$16 sps:$4 sm:$0xff]  }
  0x23   : > { %1742 = vmatpush3.bf16.msra.mxu0 %v2002_v22  ;;  %v2062_v1 = vld [vmem:[%s2274_s12 + $0x10c] ss:$16 sps:$4 sm:$0xff]   ;;  %v2064_v2 = vld [vmem:[%s2274_s12 + $0x100] ss:$16 sps:$4 sm:$0xff]   ;;  %v2065_v3 = vld [vmem:[%s2274_s12 + $0x108] ss:$16 sps:$4 sm:$0xff]  }
  0x24   : > { %1854 = vmatpush3.bf16.msra.mxu1 %v2003_v23  ;;  %1743 = vmatprep.subr.bf16.mxu0 %v2004_v24  ;;  %v2066_v4 = vld [vmem:[%s2274_s12 + $0x124] ss:$16 sps:$4 sm:$0xff]   ;;  %v2068_v5 = vld [vmem:[%s2274_s12 + $0x12c] ss:$16 sps:$4 sm:$0xff]   ;;  %v2070_v6 = vld [vmem:[%s2274_s12 + $0x120] ss:$16 sps:$4 sm:$0xff]  }
  0x25   : > { %1855 = vmatprep.subr.bf16.mxu1 %v2005_v25  ;;  %v2071_v7 = vld [vmem:[%s2274_s12 + $0x128] ss:$16 sps:$4 sm:$0xff]   ;;  %v2072_v8 = vld [vmem:[%s2274_s12 + $0x144] ss:$16 sps:$4 sm:$0xff]   ;;  %v2074_v9 = vld [vmem:[%s2274_s12 + $0x14c] ss:$16 sps:$4 sm:$0xff]  }
  0x26   : > { %v2076_v10 = vld [vmem:[%s2274_s12 + $0x140] ss:$16 sps:$4 sm:$0xff]   ;;  %v2077_v11 = vld [vmem:[%s2274_s12 + $0x148] ss:$16 sps:$4 sm:$0xff]   ;;  %v2078_v12 = vld [vmem:[%s2274_s12 + $0x164] ss:$16 sps:$4 sm:$0xff]  }
  0x27   : > { %1744 = vmatpush3.bf16.msra.mxu0 %v2006_v26  ;;  %v2080_v13 = vld [vmem:[%s2274_s12 + $0x16c] ss:$16 sps:$4 sm:$0xff]   ;;  %v2082_v14 = vld [vmem:[%s2274_s12 + $0x160] ss:$16 sps:$4 sm:$0xff]   ;;  %v2083_v15 = vld [vmem:[%s2274_s12 + $0x168] ss:$16 sps:$4 sm:$0xff]  }
  0x28   : > { %1856 = vmatpush3.bf16.msra.mxu1 %v2007_v27  ;;  %1745 = vmatprep.subr.bf16.mxu0 %v2008_v28  ;;  %v2084_v16 = vld [vmem:[%s2274_s12 + $0x184] ss:$16 sps:$4 sm:$0xff]   ;;  %v2086_v17 = vld [vmem:[%s2274_s12 + $0x18c] ss:$16 sps:$4 sm:$0xff]   ;;  %v2088_v18 = vld [vmem:[%s2274_s12 + $0x180] ss:$16 sps:$4 sm:$0xff]  }
  0x29   : > { %1857 = vmatprep.subr.bf16.mxu1 %v2009_v29  ;;  %v2089_v19 = vld [vmem:[%s2274_s12 + $0x188] ss:$16 sps:$4 sm:$0xff]   ;;  %v2090_v20 = vld [vmem:[%s2274_s12 + $0x1a4] ss:$16 sps:$4 sm:$0xff]   ;;  %v2092_v21 = vld [vmem:[%s2274_s12 + $0x1ac] ss:$16 sps:$4 sm:$0xff]  }
  0x2a   : > { %v2094_v22 = vld [vmem:[%s2274_s12 + $0x1a0] ss:$16 sps:$4 sm:$0xff]   ;;  %v2095_v23 = vld [vmem:[%s2274_s12 + $0x1a8] ss:$16 sps:$4 sm:$0xff]   ;;  %v2096_v24 = vld [vmem:[%s2274_s12 + $0x1c4] ss:$16 sps:$4 sm:$0xff]  }
  0x2b   : > { %1746 = vmatpush3.bf16.msra.mxu0 %v2010_v30  ;;  %v2098_v25 = vld [vmem:[%s2274_s12 + $0x1cc] ss:$16 sps:$4 sm:$0xff]   ;;  %v2100_v26 = vld [vmem:[%s2274_s12 + $0x1c0] ss:$16 sps:$4 sm:$0xff]   ;;  %v2101_v27 = vld [vmem:[%s2274_s12 + $0x1c8] ss:$16 sps:$4 sm:$0xff]  }
  0x2c   : > { %1858 = vmatpush3.bf16.msra.mxu1 %v2011_v31  ;;  %v2102_v28 = vld [vmem:[%s2274_s12 + $0x1e4] ss:$16 sps:$4 sm:$0xff]   ;;  %v2104_v29 = vld [vmem:[%s2274_s12 + $0x1ec] ss:$16 sps:$4 sm:$0xff]   ;;  %v2106_v30 = vld [vmem:[%s2274_s12 + $0x1e0] ss:$16 sps:$4 sm:$0xff]  }
  0x2d   : > { %v2107_v31 = vld [vmem:[%s2274_s12 + $0x1e8] ss:$16 sps:$4 sm:$0xff]  }
  0x2e   : > { %1015 = vmatmul.mubr.bf16.vlgmr.msra.gmra.mxu0 %v2012_v32 }
  0x2f   : > { %1176 = vmatmul.mubr.bf16.vlgmr.msra.gmra.mxu1 %v2015_v34  ;;  %1022 = vmatprep.mubr.bf16.mxu0 %v2018_v36 }
  0x30   : > { %1183 = vmatprep.mubr.bf16.mxu1 %v2020_v37 }
  0x36   : > { %1023 = vmatmul.mubr.bf16.gmra.mxu0 %v2022_v38 }
  0x37   : > { %1184 = vmatmul.mubr.bf16.gmra.mxu1 %v2023_v39  ;;  %1030 = vmatprep.mubr.bf16.mxu0 %v2024_v40 }
  0x38   : > { %1191 = vmatprep.mubr.bf16.mxu1 %v2026_v41  ;;  %v1371_v41 = vld [vmem:[%s2353_s24] sm:$0xff] }
  0x3e   : > { %1031 = vmatmul.mubr.bf16.gmra.mxu0 %v2028_v42 }
  0x3f   : > { %1192 = vmatmul.mubr.bf16.gmra.mxu1 %v2029_v43  ;;  %1038 = vmatprep.mubr.bf16.mxu0 %v2030_v44 }
  0x40   : > { %1199 = vmatprep.mubr.bf16.mxu1 %v2032_v45  ;;  %v1372_v45 = vld [vmem:[%s2353_s24 + $0x8] sm:$0xff] }
  0x46   : > { %1039 = vmatmul.mubr.bf16.gmra.mxu0 %v2034_v46  ;;  %v1373_v46 = vld [vmem:[%s2353_s24 + $0x10] sm:$0xff] }
  0x47   : > { %1200 = vmatmul.mubr.bf16.gmra.mxu1 %v2035_v47  ;;  %1046 = vmatprep.mubr.bf16.mxu0 %v2036_v48  ;;  %v2365_v47 = vld [vmem:[%s2353_s24 + $0x18] sm:$0xff]  ;;  %v2368_v48 = vld [vmem:[%s2353_s24 + $0x20] sm:$0xff] }
  0x48   : > { %1207 = vmatprep.mubr.bf16.mxu1 %v2038_v49  ;;  %v2371_v49 = vld [vmem:[%s2353_s24 + $0x28] sm:$0xff] }
  0x4e   : > { %1047 = vmatmul.mubr.bf16.gmra.mxu0 %v2040_v50  ;;  %v2374_v50 = vld [vmem:[%s2353_s24 + $0x30] sm:$0xff] }
  0x4f   : > { %1208 = vmatmul.mubr.bf16.gmra.mxu1 %v2041_v51  ;;  %1054 = vmatprep.mubr.bf16.mxu0 %v2042_v52  ;;  %v2377_v51 = vld [vmem:[%s2353_s24 + $0x38] sm:$0xff]  ;;  %v2380_v52 = vld [vmem:[%s2353_s24 + $0x40] sm:$0xff] }
  0x50   : > { %1215 = vmatprep.mubr.bf16.mxu1 %v2044_v53  ;;  %v2383_v53 = vld [vmem:[%s2353_s24 + $0x48] sm:$0xff] }
  0x56   : > { %1055 = vmatmul.mubr.bf16.gmra.mxu0 %v2046_v54  ;;  %v2386_v54 = vld [vmem:[%s2353_s24 + $0x50] sm:$0xff] }
  0x57   : > { %1216 = vmatmul.mubr.bf16.gmra.mxu1 %v2047_v55  ;;  %1062 = vmatprep.mubr.bf16.mxu0 %v2048_v56  ;;  %v2389_v55 = vld [vmem:[%s2353_s24 + $0x58] sm:$0xff]  ;;  %v2392_v56 = vld [vmem:[%s2353_s24 + $0x60] sm:$0xff] }
  0x58   : > { %1223 = vmatprep.mubr.bf16.mxu1 %v2050_v57  ;;  %v2395_v57 = vld [vmem:[%s2353_s24 + $0x68] sm:$0xff] }
  0x5e   : > { %1063 = vmatmul.mubr.bf16.gmra.mxu0 %v2052_v58  ;;  %v2398_v58 = vld [vmem:[%s2353_s24 + $0x70] sm:$0xff] }
  0x5f   : > { %1224 = vmatmul.mubr.bf16.gmra.mxu1 %v2053_v59  ;;  %1070 = vmatprep.mubr.bf16.mxu0 %v2054_v60  ;;  %v2401_v59 = vld [vmem:[%s2353_s24 + $0x78] sm:$0xff]  ;;  %v2404_v60 = vld [vmem:[%s2353_s24 + $0x80] sm:$0xff] }
  0x60   : > { %1231 = vmatprep.mubr.bf16.mxu1 %v2056_v61  ;;  %v2407_v61 = vld [vmem:[%s2353_s24 + $0x88] sm:$0xff] }
  0x66   : > { %1071 = vmatmul.mubr.bf16.gmra.mxu0 %v2058_v62  ;;  %v2410_v62 = vld [vmem:[%s2353_s24 + $0x90] sm:$0xff] }
  0x67   : > { %1232 = vmatmul.mubr.bf16.gmra.mxu1 %v2059_v63  ;;  %1078 = vmatprep.mubr.bf16.mxu0 %v2060_v0  ;;  %v2413_v63 = vld [vmem:[%s2353_s24 + $0x98] sm:$0xff]  ;;  %v2416_v0 = vld [vmem:[%s2353_s24 + $0xa0] sm:$0xff] }
  0x68   : > { %1239 = vmatprep.mubr.bf16.mxu1 %v2062_v1  ;;  %v2419_v1 = vld [vmem:[%s2353_s24 + $0xa8] sm:$0xff] }
  0x6e   : > { %1079 = vmatmul.mubr.bf16.gmra.mxu0 %v2064_v2  ;;  %v2422_v2 = vld [vmem:[%s2353_s24 + $0xb0] sm:$0xff] }
  0x6f   : > { %1240 = vmatmul.mubr.bf16.gmra.mxu1 %v2065_v3  ;;  %1086 = vmatprep.mubr.bf16.mxu0 %v2066_v4  ;;  %v2425_v3 = vld [vmem:[%s2353_s24 + $0xb8] sm:$0xff]  ;;  %v2428_v4 = vld [vmem:[%s2353_s24 + $0xc0] sm:$0xff] }
  0x70   : > { %1247 = vmatprep.mubr.bf16.mxu1 %v2068_v5  ;;  %v2431_v5 = vld [vmem:[%s2353_s24 + $0xc8] sm:$0xff] }
  0x76   : > { %1087 = vmatmul.mubr.bf16.gmra.mxu0 %v2070_v6 }
  0x77   : > { %1248 = vmatmul.mubr.bf16.gmra.mxu1 %v2071_v7  ;;  %1094 = vmatprep.mubr.bf16.mxu0 %v2072_v8  ;;  %v2434_v8 = vld [vmem:[%s2353_s24 + $0xd0] sm:$0xff] }
  0x78   : > { %1255 = vmatprep.mubr.bf16.mxu1 %v2074_v9  ;;  %v2437_v9 = vld [vmem:[%s2353_s24 + $0xd8] sm:$0xff] }
  0x7e   : > { %1095 = vmatmul.mubr.bf16.gmra.mxu0 %v2076_v10  ;;  %v2440_v10 = vld [vmem:[%s2353_s24 + $0xe0] sm:$0xff] }
  0x7f   : > { %1256 = vmatmul.mubr.bf16.gmra.mxu1 %v2077_v11  ;;  %1102 = vmatprep.mubr.bf16.mxu0 %v2078_v12  ;;  %v2449_v12 = vld [vmem:[%s2353_s24 + $0xe8] sm:$0xff] }
  0x80   : > { %1263 = vmatprep.mubr.bf16.mxu1 %v2080_v13  ;;  %v2452_v13 = vld [vmem:[%s2353_s24 + $0xf0] sm:$0xff] }
  0x86   : > { %1103 = vmatmul.mubr.bf16.gmra.mxu0 %v2082_v14  ;;  %v2455_v14 = vld [vmem:[%s2353_s24 + $0xf8] sm:$0xff] }
  0x87   : > { %1264 = vmatmul.mubr.bf16.gmra.mxu1 %v2083_v15  ;;  %1110 = vmatprep.mubr.bf16.mxu0 %v2084_v16 }
  0x88   : > { %1271 = vmatprep.mubr.bf16.mxu1 %v2086_v17 }
  0x8e   : > { %1111 = vmatmul.mubr.bf16.gmra.mxu0 %v2088_v18 }
  0x8f   : > { %1272 = vmatmul.mubr.bf16.gmra.mxu1 %v2089_v19  ;;  %1118 = vmatprep.mubr.bf16.mxu0 %v2090_v20 }
  0x90   : > { %1279 = vmatprep.mubr.bf16.mxu1 %v2092_v21 }
  0x96   : > { %1119 = vmatmul.mubr.bf16.gmra.mxu0 %v2094_v22 }
  0x97   : > { %1280 = vmatmul.mubr.bf16.gmra.mxu1 %v2095_v23  ;;  %1126 = vmatprep.mubr.bf16.mxu0 %v2096_v24 }
  0x98   : > { %1287 = vmatprep.mubr.bf16.mxu1 %v2098_v25 }
  0x9e   : > { %1127 = vmatmul.mubr.bf16.gmra.mxu0 %v2100_v26 }
  0x9f   : > { %1288 = vmatmul.mubr.bf16.gmra.mxu1 %v2101_v27  ;;  %1134 = vmatprep.mubr.bf16.mxu0 %v2102_v28 }
  0xa0   : > { %1295 = vmatprep.mubr.bf16.mxu1 %v2104_v29 }
  0xa6   : > { %1135 = vmatmul.mubr.bf16.gmra.mxu0 %v2106_v30 }
  0xa7   : > { %1296 = vmatmul.mubr.bf16.gmra.mxu1 %v2107_v31 }
  0xee   : > { %v1747_v32 = vpop.f32.mrf.mxu0 }
  0xef   : > { %v1859_v33 = vpop.f32.mrf.mxu1 }
  0xf0   : > { %v1748_v34 = vpop.f32.mrf.mxu0 }
  0xf1   : > { %v1749_v35 = vadd.f32 %v1748_v34, %v1747_v32  ;;  %v1860_v36 = vpop.f32.mrf.mxu1 }
  0xf2   : > { %v1861_v37 = vadd.f32 %v1860_v36, %v1859_v33  ;;  %v1750_v38 = vpop.f32.mrf.mxu0 }
  0xf3   : > { %v1862_v39 = vpop.f32.mrf.mxu1 }
  0xf4   : > { %v1178_v40 = vadd.f32 %v1861_v37, %v1749_v35  ;;  %v1751_v42 = vpop.f32.mrf.mxu0 }
  0xf5   : > { %v1752_v43 = vadd.f32 %v1751_v42, %v1750_v38  ;;  %v1863_v44 = vpop.f32.mrf.mxu1 }
  0xf6   : > { %v1864_v6 = vadd.f32 %v1863_v44, %v1862_v39  ;;  %v1753_v7 = vpop.f32.mrf.mxu0  ;;  %1336 = vst [vmem:[%s2360_s26] sm:$0xff] %v1178_v40  ;;  %v1435_v15 = vadd.f32 %v1371_v41, %v1178_v40 }
  0xf7   : > { %v1865_v11 = vpop.f32.mrf.mxu1 }
  0xf8   : > { %v1181_v16 = vadd.f32 %v1864_v6, %v1752_v43  ;;  %v1754_v17 = vpop.f32.mrf.mxu0  ;;  %1467 = vst [vmem:[%s2446_s30] sm:$0xff] %v1435_v15 }
  0xf9   : > { %v1755_v18 = vadd.f32 %v1754_v17, %v1753_v7  ;;  %v1866_v19 = vpop.f32.mrf.mxu1 }
  0xfa   : > { %v1867_v20 = vadd.f32 %v1866_v19, %v1865_v11  ;;  %v1756_v21 = vpop.f32.mrf.mxu0  ;;  %1337 = vst [vmem:[%s2360_s26 + $0x8] sm:$0xff] %v1181_v16  ;;  %v1436_v23 = vadd.f32 %v1372_v45, %v1181_v16 }
  0xfb   : > { %v1868_v22 = vpop.f32.mrf.mxu1 }
  0xfc   : > { %v1186_v24 = vadd.f32 %v1867_v20, %v1755_v18  ;;  %v1757_v25 = vpop.f32.mrf.mxu0  ;;  %1468 = vst [vmem:[%s2446_s30 + $0x8] sm:$0xff] %v1436_v23 }
  0xfd   : > { %v1758_v26 = vadd.f32 %v1757_v25, %v1756_v21  ;;  %v1869_v27 = vpop.f32.mrf.mxu1 }
  0xfe   : > { %v1870_v28 = vadd.f32 %v1869_v27, %v1868_v22  ;;  %v1759_v29 = vpop.f32.mrf.mxu0  ;;  %1338 = vst [vmem:[%s2360_s26 + $0x10] sm:$0xff] %v1186_v24  ;;  %v1437_v31 = vadd.f32 %v1373_v46, %v1186_v24 }
  0xff   : > { %v1871_v30 = vpop.f32.mrf.mxu1 }
 0x100   : > { %v1189_v32 = vadd.f32 %v1870_v28, %v1758_v26  ;;  %v1760_v33 = vpop.f32.mrf.mxu0  ;;  %1469 = vst [vmem:[%s2446_s30 + $0x10] sm:$0xff] %v1437_v31 }
 0x101   : > { %v1761_v34 = vadd.f32 %v1760_v33, %v1759_v29  ;;  %v1872_v35 = vpop.f32.mrf.mxu1 }
 0x102   : > { %v1873_v36 = vadd.f32 %v1872_v35, %v1871_v30  ;;  %v1762_v37 = vpop.f32.mrf.mxu0  ;;  %1339 = vst [vmem:[%s2360_s26 + $0x18] sm:$0xff] %v1189_v32  ;;  %v1438_v39 = vadd.f32 %v2365_v47, %v1189_v32 }
 0x103   : > { %v1874_v38 = vpop.f32.mrf.mxu1 }
 0x104   : > { %v1194_v40 = vadd.f32 %v1873_v36, %v1761_v34  ;;  %v1763_v41 = vpop.f32.mrf.mxu0  ;;  %1470 = vst [vmem:[%s2446_s30 + $0x18] sm:$0xff] %v1438_v39 }
 0x105   : > { %v1764_v42 = vadd.f32 %v1763_v41, %v1762_v37  ;;  %v1875_v43 = vpop.f32.mrf.mxu1 }
 0x106   : > { %v1876_v44 = vadd.f32 %v1875_v43, %v1874_v38  ;;  %v1765_v45 = vpop.f32.mrf.mxu0  ;;  %1340 = vst [vmem:[%s2360_s26 + $0x20] sm:$0xff] %v1194_v40  ;;  %v1439_v6 = vadd.f32 %v2368_v48, %v1194_v40 }
 0x107   : > { %v1877_v46 = vpop.f32.mrf.mxu1 }
 0x108   : > { %v1197_v7 = vadd.f32 %v1876_v44, %v1764_v42  ;;  %v1766_v11 = vpop.f32.mrf.mxu0  ;;  %1471 = vst [vmem:[%s2446_s30 + $0x20] sm:$0xff] %v1439_v6 }
 0x109   : > { %v1767_v15 = vadd.f32 %v1766_v11, %v1765_v45  ;;  %v1878_v16 = vpop.f32.mrf.mxu1 }
 0x10a   : > { %v1879_v47 = vadd.f32 %v1878_v16, %v1877_v46  ;;  %v1768_v17 = vpop.f32.mrf.mxu0  ;;  %1341 = vst [vmem:[%s2360_s26 + $0x28] sm:$0xff] %v1197_v7  ;;  %v1440_v19 = vadd.f32 %v2371_v49, %v1197_v7 }
 0x10b   : > { %v1880_v18 = vpop.f32.mrf.mxu1 }
 0x10c   : > { %v1202_v20 = vadd.f32 %v1879_v47, %v1767_v15  ;;  %v1769_v21 = vpop.f32.mrf.mxu0  ;;  %1472 = vst [vmem:[%s2446_s30 + $0x28] sm:$0xff] %v1440_v19 }
 0x10d   : > { %v1770_v22 = vadd.f32 %v1769_v21, %v1768_v17  ;;  %v1881_v23 = vpop.f32.mrf.mxu1 }
 0x10e   : > { %v1882_v48 = vadd.f32 %v1881_v23, %v1880_v18  ;;  %v1771_v24 = vpop.f32.mrf.mxu0  ;;  %1342 = vst [vmem:[%s2360_s26 + $0x30] sm:$0xff] %v1202_v20  ;;  %v1441_v26 = vadd.f32 %v2374_v50, %v1202_v20 }
 0x10f   : > { %v1883_v25 = vpop.f32.mrf.mxu1 }
 0x110   : > { %v1205_v27 = vadd.f32 %v1882_v48, %v1770_v22  ;;  %v1772_v28 = vpop.f32.mrf.mxu0  ;;  %1473 = vst [vmem:[%s2446_s30 + $0x30] sm:$0xff] %v1441_v26 }
 0x111   : > { %v1773_v29 = vadd.f32 %v1772_v28, %v1771_v24  ;;  %v1884_v30 = vpop.f32.mrf.mxu1 }
 0x112   : > { %v1885_v49 = vadd.f32 %v1884_v30, %v1883_v25  ;;  %v1774_v31 = vpop.f32.mrf.mxu0  ;;  %1343 = vst [vmem:[%s2360_s26 + $0x38] sm:$0xff] %v1205_v27  ;;  %v1442_v33 = vadd.f32 %v2377_v51, %v1205_v27 }
 0x113   : > { %v1886_v32 = vpop.f32.mrf.mxu1 }
 0x114   : > { %v1210_v34 = vadd.f32 %v1885_v49, %v1773_v29  ;;  %v1775_v35 = vpop.f32.mrf.mxu0  ;;  %1474 = vst [vmem:[%s2446_s30 + $0x38] sm:$0xff] %v1442_v33 }
 0x115   : > { %v1776_v36 = vadd.f32 %v1775_v35, %v1774_v31  ;;  %v1887_v37 = vpop.f32.mrf.mxu1 }
 0x116   : > { %v1888_v50 = vadd.f32 %v1887_v37, %v1886_v32  ;;  %v1777_v38 = vpop.f32.mrf.mxu0  ;;  %1344 = vst [vmem:[%s2360_s26 + $0x40] sm:$0xff] %v1210_v34  ;;  %v1443_v40 = vadd.f32 %v2380_v52, %v1210_v34 }
 0x117   : > { %v1889_v39 = vpop.f32.mrf.mxu1 }
 0x118   : > { %v1213_v41 = vadd.f32 %v1888_v50, %v1776_v36  ;;  %v1778_v42 = vpop.f32.mrf.mxu0  ;;  %1475 = vst [vmem:[%s2446_s30 + $0x40] sm:$0xff] %v1443_v40 }
 0x119   : > { %v1779_v43 = vadd.f32 %v1778_v42, %v1777_v38  ;;  %v1890_v44 = vpop.f32.mrf.mxu1 }
 0x11a   : > { %v1891_v51 = vadd.f32 %v1890_v44, %v1889_v39  ;;  %v1780_v45 = vpop.f32.mrf.mxu0  ;;  %1345 = vst [vmem:[%s2360_s26 + $0x48] sm:$0xff] %v1213_v41  ;;  %v1444_v6 = vadd.f32 %v2383_v53, %v1213_v41 }
 0x11b   : > { %v1892_v46 = vpop.f32.mrf.mxu1 }
 0x11c   : > { %v1218_v7 = vadd.f32 %v1891_v51, %v1779_v43  ;;  %v1781_v11 = vpop.f32.mrf.mxu0  ;;  %1476 = vst [vmem:[%s2446_s30 + $0x48] sm:$0xff] %v1444_v6 }
 0x11d   : > { %v1782_v15 = vadd.f32 %v1781_v11, %v1780_v45  ;;  %v1893_v16 = vpop.f32.mrf.mxu1 }
 0x11e   : > { %v1894_v52 = vadd.f32 %v1893_v16, %v1892_v46  ;;  %v1783_v47 = vpop.f32.mrf.mxu0  ;;  %1346 = vst [vmem:[%s2360_s26 + $0x50] sm:$0xff] %v1218_v7  ;;  %v1445_v18 = vadd.f32 %v2386_v54, %v1218_v7 }
 0x11f   : > { %v1895_v17 = vpop.f32.mrf.mxu1 }
 0x120   : > { %v1221_v19 = vadd.f32 %v1894_v52, %v1782_v15  ;;  %v1784_v20 = vpop.f32.mrf.mxu0  ;;  %1477 = vst [vmem:[%s2446_s30 + $0x50] sm:$0xff] %v1445_v18 }
 0x121   : > { %v1785_v21 = vadd.f32 %v1784_v20, %v1783_v47  ;;  %v1896_v22 = vpop.f32.mrf.mxu1 }
 0x122   : > { %v1897_v53 = vadd.f32 %v1896_v22, %v1895_v17  ;;  %v1786_v23 = vpop.f32.mrf.mxu0  ;;  %1347 = vst [vmem:[%s2360_s26 + $0x58] sm:$0xff] %v1221_v19  ;;  %v1446_v24 = vadd.f32 %v2389_v55, %v1221_v19 }
 0x123   : > { %v1898_v48 = vpop.f32.mrf.mxu1 }
 0x124   : > { %v1226_v25 = vadd.f32 %v1897_v53, %v1785_v21  ;;  %v1787_v26 = vpop.f32.mrf.mxu0  ;;  %1478 = vst [vmem:[%s2446_s30 + $0x58] sm:$0xff] %v1446_v24 }
 0x125   : > { %v1788_v27 = vadd.f32 %v1787_v26, %v1786_v23  ;;  %v1899_v28 = vpop.f32.mrf.mxu1 }
 0x126   : > { %v1900_v54 = vadd.f32 %v1899_v28, %v1898_v48  ;;  %v1789_v29 = vpop.f32.mrf.mxu0  ;;  %1348 = vst [vmem:[%s2360_s26 + $0x60] sm:$0xff] %v1226_v25  ;;  %v1447_v49 = vadd.f32 %v2392_v56, %v1226_v25 }
 0x127   : > { %v1901_v30 = vpop.f32.mrf.mxu1 }
 0x128   : > { %v1229_v31 = vadd.f32 %v1900_v54, %v1788_v27  ;;  %v1790_v32 = vpop.f32.mrf.mxu0  ;;  %1479 = vst [vmem:[%s2446_s30 + $0x60] sm:$0xff] %v1447_v49 }
 0x129   : > { %v1791_v33 = vadd.f32 %v1790_v32, %v1789_v29  ;;  %v1902_v34 = vpop.f32.mrf.mxu1 }
 0x12a   : > { %v1903_v55 = vadd.f32 %v1902_v34, %v1901_v30  ;;  %v1792_v35 = vpop.f32.mrf.mxu0  ;;  %1349 = vst [vmem:[%s2360_s26 + $0x68] sm:$0xff] %v1229_v31  ;;  %v1448_v37 = vadd.f32 %v2395_v57, %v1229_v31 }
 0x12b   : > { %v1904_v36 = vpop.f32.mrf.mxu1 }
 0x12c   : > { %v1234_v50 = vadd.f32 %v1903_v55, %v1791_v33  ;;  %v1793_v38 = vpop.f32.mrf.mxu0  ;;  %1480 = vst [vmem:[%s2446_s30 + $0x68] sm:$0xff] %v1448_v37 }
 0x12d   : > { %v1794_v39 = vadd.f32 %v1793_v38, %v1792_v35  ;;  %v1905_v40 = vpop.f32.mrf.mxu1 }
 0x12e   : > { %v1906_v56 = vadd.f32 %v1905_v40, %v1904_v36  ;;  %v1795_v41 = vpop.f32.mrf.mxu0  ;;  %1350 = vst [vmem:[%s2360_s26 + $0x70] sm:$0xff] %v1234_v50  ;;  %v1449_v43 = vadd.f32 %v2398_v58, %v1234_v50 }
 0x12f   : > { %v1907_v42 = vpop.f32.mrf.mxu1 }
 0x130   : > { %v1237_v44 = vadd.f32 %v1906_v56, %v1794_v39  ;;  %v1796_v51 = vpop.f32.mrf.mxu0  ;;  %1481 = vst [vmem:[%s2446_s30 + $0x70] sm:$0xff] %v1449_v43 }
 0x131   : > { %v1797_v45 = vadd.f32 %v1796_v51, %v1795_v41  ;;  %v1908_v46 = vpop.f32.mrf.mxu1 }
 0x132   : > { %v1909_v57 = vadd.f32 %v1908_v46, %v1907_v42  ;;  %v1798_v6 = vpop.f32.mrf.mxu0  ;;  %1351 = vst [vmem:[%s2360_s26 + $0x78] sm:$0xff] %v1237_v44  ;;  %v1450_v11 = vadd.f32 %v2401_v59, %v1237_v44 }
 0x133   : > { %v1910_v7 = vpop.f32.mrf.mxu1 }
 0x134   : > { %v1242_v15 = vadd.f32 %v1909_v57, %v1797_v45  ;;  %v1799_v16 = vpop.f32.mrf.mxu0  ;;  %1482 = vst [vmem:[%s2446_s30 + $0x78] sm:$0xff] %v1450_v11 }
 0x135   : > { %v1800_v52 = vadd.f32 %v1799_v16, %v1798_v6  ;;  %v1911_v47 = vpop.f32.mrf.mxu1 }
 0x136   : > { %v1912_v58 = vadd.f32 %v1911_v47, %v1910_v7  ;;  %v1801_v17 = vpop.f32.mrf.mxu0  ;;  %1352 = vst [vmem:[%s2360_s26 + $0x80] sm:$0xff] %v1242_v15  ;;  %v1451_v19 = vadd.f32 %v2404_v60, %v1242_v15 }
 0x137   : > { %v1913_v18 = vpop.f32.mrf.mxu1 }
 0x138   : > { %v1245_v20 = vadd.f32 %v1912_v58, %v1800_v52  ;;  %v1802_v21 = vpop.f32.mrf.mxu0  ;;  %1483 = vst [vmem:[%s2446_s30 + $0x80] sm:$0xff] %v1451_v19 }
 0x139   : > { %v1803_v22 = vadd.f32 %v1802_v21, %v1801_v17  ;;  %v1914_v53 = vpop.f32.mrf.mxu1 }
 0x13a   : > { %v1915_v59 = vadd.f32 %v1914_v53, %v1913_v18  ;;  %v1804_v23 = vpop.f32.mrf.mxu0  ;;  %1353 = vst [vmem:[%s2360_s26 + $0x88] sm:$0xff] %v1245_v20  ;;  %v1452_v24 = vadd.f32 %v2407_v61, %v1245_v20 }
 0x13b   : > { %v1916_v48 = vpop.f32.mrf.mxu1 }
 0x13c   : > { %v1250_v25 = vadd.f32 %v1915_v59, %v1803_v22  ;;  %v1805_v26 = vpop.f32.mrf.mxu0  ;;  %1484 = vst [vmem:[%s2446_s30 + $0x88] sm:$0xff] %v1452_v24 }
 0x13d   : > { %v1806_v27 = vadd.f32 %v1805_v26, %v1804_v23  ;;  %v1917_v28 = vpop.f32.mrf.mxu1 }
 0x13e   : > { %v1918_v60 = vadd.f32 %v1917_v28, %v1916_v48  ;;  %v1807_v54 = vpop.f32.mrf.mxu0  ;;  %1354 = vst [vmem:[%s2360_s26 + $0x90] sm:$0xff] %v1250_v25  ;;  %v1453_v30 = vadd.f32 %v2410_v62, %v1250_v25 }
 0x13f   : > { %v1919_v29 = vpop.f32.mrf.mxu1 }
 0x140   : > { %v1253_v49 = vadd.f32 %v1918_v60, %v1806_v27  ;;  %v1808_v31 = vpop.f32.mrf.mxu0  ;;  %1485 = vst [vmem:[%s2446_s30 + $0x90] sm:$0xff] %v1453_v30 }
 0x141   : > { %v1809_v32 = vadd.f32 %v1808_v31, %v1807_v54  ;;  %v1920_v33 = vpop.f32.mrf.mxu1 }
 0x142   : > { %v1921_v61 = vadd.f32 %v1920_v33, %v1919_v29  ;;  %v1810_v34 = vpop.f32.mrf.mxu0  ;;  %1355 = vst [vmem:[%s2360_s26 + $0x98] sm:$0xff] %v1253_v49  ;;  %v1454_v35 = vadd.f32 %v2413_v63, %v1253_v49 }
 0x143   : > { %v1922_v55 = vpop.f32.mrf.mxu1 }
 0x144   : > { %v1258_v36 = vadd.f32 %v1921_v61, %v1809_v32  ;;  %v1811_v37 = vpop.f32.mrf.mxu0  ;;  %1486 = vst [vmem:[%s2446_s30 + $0x98] sm:$0xff] %v1454_v35 }
 0x145   : > { %v1812_v50 = vadd.f32 %v1811_v37, %v1810_v34  ;;  %v1923_v38 = vpop.f32.mrf.mxu1 }
 0x146   : > { %v1924_v62 = vadd.f32 %v1923_v38, %v1922_v55  ;;  %v1813_v39 = vpop.f32.mrf.mxu0  ;;  %1356 = vst [vmem:[%s2360_s26 + $0xa0] sm:$0xff] %v1258_v36  ;;  %v1455_v56 = vadd.f32 %v2416_v0, %v1258_v36 }
 0x147   : > { %v1925_v40 = vpop.f32.mrf.mxu1 }
 0x148   : > { %v1261_v41 = vadd.f32 %v1924_v62, %v1812_v50  ;;  %v1814_v42 = vpop.f32.mrf.mxu0  ;;  %1487 = vst [vmem:[%s2446_s30 + $0xa0] sm:$0xff] %v1455_v56 }
 0x149   : > { %v1815_v43 = vadd.f32 %v1814_v42, %v1813_v39  ;;  %v1926_v44 = vpop.f32.mrf.mxu1 }
 0x14a   : > { %v1927_v63 = vadd.f32 %v1926_v44, %v1925_v40  ;;  %v1816_v51 = vpop.f32.mrf.mxu0  ;;  %1357 = vst [vmem:[%s2360_s26 + $0xa8] sm:$0xff] %v1261_v41  ;;  %v1456_v46 = vadd.f32 %v2419_v1, %v1261_v41 }
 0x14b   : > { %v1928_v45 = vpop.f32.mrf.mxu1 }
 0x14c   : > { %v1266_v57 = vadd.f32 %v1927_v63, %v1815_v43  ;;  %v1817_v6 = vpop.f32.mrf.mxu0  ;;  %1488 = vst [vmem:[%s2446_s30 + $0xa8] sm:$0xff] %v1456_v46 }
 0x14d   : > { %v1818_v7 = vadd.f32 %v1817_v6, %v1816_v51  ;;  %v1929_v11 = vpop.f32.mrf.mxu1 }
 0x14e   : > { %v1930_v0 = vadd.f32 %v1929_v11, %v1928_v45  ;;  %v1819_v15 = vpop.f32.mrf.mxu0  ;;  %1358 = vst [vmem:[%s2360_s26 + $0xb0] sm:$0xff] %v1266_v57  ;;  %v1457_v52 = vadd.f32 %v2422_v2, %v1266_v57 }
 0x14f   : > { %v1931_v16 = vpop.f32.mrf.mxu1 }
 0x150   : > { %v1269_v47 = vadd.f32 %v1930_v0, %v1818_v7  ;;  %v1820_v58 = vpop.f32.mrf.mxu0  ;;  %1489 = vst [vmem:[%s2446_s30 + $0xb0] sm:$0xff] %v1457_v52 }
 0x151   : > { %v1821_v17 = vadd.f32 %v1820_v58, %v1819_v15  ;;  %v1932_v18 = vpop.f32.mrf.mxu1 }
 0x152   : > { %v1933_v1 = vadd.f32 %v1932_v18, %v1931_v16  ;;  %v1822_v19 = vpop.f32.mrf.mxu0  ;;  %1359 = vst [vmem:[%s2360_s26 + $0xb8] sm:$0xff] %v1269_v47  ;;  %v1458_v21 = vadd.f32 %v2425_v3, %v1269_v47 }
 0x153   : > { %v1934_v20 = vpop.f32.mrf.mxu1 }
 0x154   : > { %v1274_v22 = vadd.f32 %v1933_v1, %v1821_v17  ;;  %v1823_v53 = vpop.f32.mrf.mxu0  ;;  %1490 = vst [vmem:[%s2446_s30 + $0xb8] sm:$0xff] %v1458_v21 }
 0x155   : > { %v1824_v59 = vadd.f32 %v1823_v53, %v1822_v19  ;;  %v1935_v23 = vpop.f32.mrf.mxu1 }
 0x156   : > { %v1936_v2 = vadd.f32 %v1935_v23, %v1934_v20  ;;  %v1825_v48 = vpop.f32.mrf.mxu0  ;;  %1360 = vst [vmem:[%s2360_s26 + $0xc0] sm:$0xff] %v1274_v22  ;;  %v1459_v25 = vadd.f32 %v2428_v4, %v1274_v22 }
 0x157   : > { %v1937_v24 = vpop.f32.mrf.mxu1 }
 0x158   : > { %v1277_v26 = vadd.f32 %v1936_v2, %v1824_v59  ;;  %v1826_v27 = vpop.f32.mrf.mxu0  ;;  %1491 = vst [vmem:[%s2446_s30 + $0xc0] sm:$0xff] %v1459_v25 }
 0x159   : > { %v1827_v28 = vadd.f32 %v1826_v27, %v1825_v48  ;;  %v1938_v60 = vpop.f32.mrf.mxu1 }
 0x15a   : > { %v1939_v3 = vadd.f32 %v1938_v60, %v1937_v24  ;;  %v1828_v54 = vpop.f32.mrf.mxu0  ;;  %1361 = vst [vmem:[%s2360_s26 + $0xc8] sm:$0xff] %v1277_v26  ;;  %v1460_v30 = vadd.f32 %v2431_v5, %v1277_v26 }
 0x15b   : > { %v1940_v29 = vpop.f32.mrf.mxu1 }
 0x15c   : > { %v1282_v49 = vadd.f32 %v1939_v3, %v1827_v28  ;;  %v1829_v31 = vpop.f32.mrf.mxu0  ;;  %1492 = vst [vmem:[%s2446_s30 + $0xc8] sm:$0xff] %v1460_v30 }
 0x15d   : > { %v1830_v32 = vadd.f32 %v1829_v31, %v1828_v54  ;;  %v1941_v33 = vpop.f32.mrf.mxu1 }
 0x15e   : > { %v1942_v4 = vadd.f32 %v1941_v33, %v1940_v29  ;;  %v1831_v61 = vpop.f32.mrf.mxu0  ;;  %1362 = vst [vmem:[%s2360_s26 + $0xd0] sm:$0xff] %v1282_v49  ;;  %v1461_v55 = vadd.f32 %v2434_v8, %v1282_v49 }
 0x15f   : > { %v1943_v34 = vpop.f32.mrf.mxu1 }
 0x160   : > { %v1285_v35 = vadd.f32 %v1942_v4, %v1830_v32  ;;  %v1832_v36 = vpop.f32.mrf.mxu0  ;;  %1493 = vst [vmem:[%s2446_s30 + $0xd0] sm:$0xff] %v1461_v55 }
 0x161   : > { %v1833_v37 = vadd.f32 %v1832_v36, %v1831_v61  ;;  %v1944_v50 = vpop.f32.mrf.mxu1 }
 0x162   : > { %v1945_v5 = vadd.f32 %v1944_v50, %v1943_v34  ;;  %v1834_v38 = vpop.f32.mrf.mxu0  ;;  %1363 = vst [vmem:[%s2360_s26 + $0xd8] sm:$0xff] %v1285_v35  ;;  %v1462_v39 = vadd.f32 %v2437_v9, %v1285_v35 }
 0x163   : > { %v1946_v62 = vpop.f32.mrf.mxu1 }
 0x164   : > { %v1290_v40 = vadd.f32 %v1945_v5, %v1833_v37  ;;  %v1835_v56 = vpop.f32.mrf.mxu0  ;;  %1494 = vst [vmem:[%s2446_s30 + $0xd8] sm:$0xff] %v1462_v39 }
 0x165   : > { %v1836_v41 = vadd.f32 %v1835_v56, %v1834_v38  ;;  %v1947_v42 = vpop.f32.mrf.mxu1 }
 0x166   : > { %v1948_v8 = vadd.f32 %v1947_v42, %v1946_v62  ;;  %v1837_v43 = vpop.f32.mrf.mxu0  ;;  %1364 = vst [vmem:[%s2360_s26 + $0xe0] sm:$0xff] %v1290_v40  ;;  %v1463_v63 = vadd.f32 %v2440_v10, %v1290_v40 }
 0x167   : > { %v1949_v44 = vpop.f32.mrf.mxu1 }
 0x168   : > { %v1293_v51 = vadd.f32 %v1948_v8, %v1836_v41  ;;  %v1838_v45 = vpop.f32.mrf.mxu0  ;;  %1495 = vst [vmem:[%s2446_s30 + $0xe0] sm:$0xff] %v1463_v63 }
 0x169   : > { %v1839_v46 = vadd.f32 %v1838_v45, %v1837_v43  ;;  %v1950_v57 = vpop.f32.mrf.mxu1 }
 0x16a   : > { %v1951_v9 = vadd.f32 %v1950_v57, %v1949_v44  ;;  %v1840_v6 = vpop.f32.mrf.mxu0  ;;  %1365 = vst [vmem:[%s2360_s26 + $0xe8] sm:$0xff] %v1293_v51  ;;  %v1464_v11 = vadd.f32 %v2449_v12, %v1293_v51 }
 0x16b   : > { %v1952_v7 = vpop.f32.mrf.mxu1 }
 0x16c   : > { %v1298_v0 = vadd.f32 %v1951_v9, %v1839_v46  ;;  %v1841_v15 = vpop.f32.mrf.mxu0  ;;  %1496 = vst [vmem:[%s2446_s30 + $0xe8] sm:$0xff] %v1464_v11 }
 0x16d   : > { %v1842_v16 = vadd.f32 %v1841_v15, %v1840_v6  ;;  %v1953_v10 = vpop.f32.mrf.mxu1 }
 0x16e   : > { %v1954_v52 = vadd.f32 %v1953_v10, %v1952_v7  ;;  %1366 = vst [vmem:[%s2360_s26 + $0xf0] sm:$0xff] %v1298_v0  ;;  %v1465_v47 = vadd.f32 %v2452_v13, %v1298_v0 }
 0x170   : > { %v1301_v58 = vadd.f32 %v1954_v52, %v1842_v16  ;;  %1497 = vst [vmem:[%s2446_s30 + $0xf0] sm:$0xff] %v1465_v47 }
 0x172   : > { %1367 = vst [vmem:[%s2360_s26 + $0xf8] sm:$0xff] %v1301_v58  ;;  %v1466_v17 = vadd.f32 %v2455_v14, %v1301_v58 }
 0x174   : > { %1498 = vst [vmem:[%s2446_s30 + $0xf8] sm:$0xff] %v1466_v17 }
 0x175 PF: > { %s15_s17 = sadd.s32 1, %s2130_s17   ;;  %s2564_s15 = smov %s2126_s16 }
 0x176   : > { %p12_p5 = scmp.ge.s32.totalorder %s15_s17, 4   ;;  %s2565_s16 = smov %s2567_s18 }
 0x178   :  { %14 = sbr.rel (!%p12_p5) target bundleno = 2 (0x2), region = 86 }

// kernel: _lightgcn_light_out.5
= control target key start
LH: loop header
LB: loop body
LE: loop exit
PB: predicated region body
PF: predicated region fallthrough
CT: control target
= control target key end

     0   :  { %10 = vsyncpa [#allocation3], 0  ;;  %s2753_s0 = inlined_call_operand.vmem [shape: bf16[512,512], index: 0, kind: input, shape index: {}]   ;;  %s2754_s1 = inlined_call_operand.vmem [shape: bf16[512,128], index: 1, kind: input, shape index: {}]   ;;  %s2755_s2 = inlined_call_operand.vmem [shape: f32[512,128], index: 2, kind: input, shape index: {}, may-alias: {2,4}]   ;;  %s2756_s3 = inlined_call_operand.hbm [shape: f32[512,128], index: 3, kind: output, shape index: {0}]   ;;  %s2757_s4 = inlined_call_operand.vmem [shape: f32[512,128], index: 4, kind: output, shape index: {1}, may-alias: {2,4}]  }
   0x1   :  { %12 = vsyncpa [#allocation3 + $0x1], 0  ;;  %s2267_s15 = smov 0   ;;  %s2269_s16 = smov 0  }
   0x2   :  { %s2271_s17 = smov 0   ;;  %s2273_s18 = smov 0  }
   0x3   :  { %s2275_s19 = smov 0   ;;  %s2277_s20 = smov 0  }
   0x4 LB: > { %s1635_s21 = sadd.s32 4294967295, %s2237_s20   ;;  %s1636_s22 = sadd.s32 4294967294, %s2237_s20   ;;  %s2237_s20 = sphi %s2277_s20, %s18_s20   ;;  %s2233_s19 = sphi %s2275_s19, %s2764_s19   ;;  %s2229_s18 = sphi %s2273_s18, %s2763_s18   ;;  %s2225_s17 = sphi %s2271_s17, %s2762_s17   ;;  %s2221_s16 = sphi %s2269_s16, %s2761_s16   ;;  %s2217_s15 = sphi %s2267_s15, %s2760_s15  }
   0x5   : > { %s30_s23 = sadd.s32 1, %s2233_s19  ;;  %s112_s24 = sadd.s32 1, %s2225_s17 }
   0x6   : > { %p32_p0 = scmp.ge.s32.totalorder %s30_s23, 2  ;;  %p122_p1 = scmp.ne.s32.totalorder %s2225_s17, %s2221_s16 }
   0x7   : > { %p123_p2 = scmp.eq.s32.totalorder %s1635_s21, 1  ;;  %p128_p3 = scmp.ne.s32.totalorder %s2221_s16, %s2217_s15 }
   0x8   : > { %s2766_s23 = smov (%p32_p0, %s30_s23), 0  ;;  %p129_p5 = scmp.eq.s32.totalorder %s1636_s22, 1 }
   0x9   : > { %p2307_p4 = por %p123_p2, %p122_p1  ;;  %s109_s26 = ssub.s32 %s2233_s19, %s2766_s23 }
   0xa   : > { %p1639_p6 = scmp.ge.s32.totalorder %s2237_s20, 1  ;;  %p110_p7 = scmp.eq.s32.totalorder %s109_s26, 0 }
   0xb   : > { %p2314_p8 = por %p129_p5, %p128_p3  ;;  %p200_p9 = scmp.lt.s32.totalorder %s2237_s20, 3 }
   0xc   : > { %s2320_s28 = scalar_select %p110_p7, %s2225_s17, %s112_s24  }
   0xd   : > { %p201_p10 = pnand %p1639_p6, %p200_p9 }
   0xe   : > { %s1641_s29 = sshll.u32 (!%p201_p10), %s2229_s18, 5 }
   0xf   : > { %204 = sbr.rel (%p201_p10) target bundleno = 392 (0x188), region = 32  ;;  %p243_p11 = scmp.lt.s32.totalorder (!%p201_p10), %s1641_s29, 63 }
  0x14   : > { %v2033_v0 = vld [vmem:[%s2754_s1 + $0x78] sm:$0xff]   ;;  %v2037_v4 = vld [vmem:[%s2754_s1 + $0x70] sm:$0xff]   ;;  %v2041_v8 = vld [vmem:[%s2754_s1 + $0x68] sm:$0xff]   ;;  %s2768_s29 = smov (!%p243_p11, %s1641_s29), 63 }
  0x15   : > { %v2034_v1 = vld [vmem:[%s2754_s1 + $0xf8] sm:$0xff]   ;;  %1751 = vmatprep.subr.bf16.mxu0 %v2033_v0  ;;  %v2038_v5 = vld [vmem:[%s2754_s1 + $0xf0] sm:$0xff]   ;;  %v2042_v9 = vld [vmem:[%s2754_s1 + $0xe8] sm:$0xff]   ;;  %s1749_s11 = sshll.u32 %s2768_s29, 4  ;;  %s1645_s10 = sshll.u32 %s2768_s29, 3 }
  0x16   : > { %v2035_v2 = vld [vmem:[%s2754_s1 + $0x38] sm:$0xff]   ;;  %1863 = vmatprep.subr.bf16.mxu1 %v2034_v1  ;;  %v2039_v6 = vld [vmem:[%s2754_s1 + $0x30] sm:$0xff]   ;;  %v2043_v10 = vld [vmem:[%s2754_s1 + $0x28] sm:$0xff]   ;;  %s2419_s5 = scalar_lea.vmem %s2753_s0, %s1749_s11  ;;  %s231_s11 = sand.u32 1, %s2221_s16  }
  0x17   : > { %v2036_v3 = vld [vmem:[%s2754_s1 + $0xb8] sm:$0xff]   ;;  %1752 = vmatpush3.bf16.msra.mxu0 %v2035_v2  ;;  %v2040_v7 = vld [vmem:[%s2754_s1 + $0xb0] sm:$0xff]   ;;  %v2044_v11 = vld [vmem:[%s2754_s1 + $0xa8] sm:$0xff]   ;;  %s2498_s14 = scalar_lea.vmem %s2755_s2, %s1645_s10  ;;  %s2502_s21 = sshll.u32 %s231_s11, 8 }
  0x18   : > { %1864 = vmatpush3.bf16.msra.mxu1 %v2036_v3  ;;  %1753 = vmatprep.subr.bf16.mxu0 %v2037_v4  ;;  %v2045_v12 = vld [vmem:[%s2754_s1 + $0x60] sm:$0xff]   ;;  %v2049_v16 = vld [vmem:[%s2754_s1 + $0x58] sm:$0xff]   ;;  %v2053_v20 = vld [vmem:[%s2754_s1 + $0x50] sm:$0xff]   ;;  %s2590_s26 = scalar_lea.vmem %s2757_s4, %s1645_s10  ;;  %s2602_s30 = scalar_lea.vmem [#allocation2], %s2502_s21 }
  0x19   : > { %1865 = vmatprep.subr.bf16.mxu1 %v2038_v5  ;;  %v2046_v13 = vld [vmem:[%s2754_s1 + $0xe0] sm:$0xff]   ;;  %v2050_v17 = vld [vmem:[%s2754_s1 + $0xd8] sm:$0xff]   ;;  %v2054_v21 = vld [vmem:[%s2754_s1 + $0xd0] sm:$0xff]   ;;  %s1750_s29 = sshll.u32 %s2229_s18, 12  ;;  %s2707_s18 = scalar_lea.sflag [#allocation3], %s231_s11 }
  0x1a   : > { %v2047_v14 = vld [vmem:[%s2754_s1 + $0x20] sm:$0xff]   ;;  %v2051_v18 = vld [vmem:[%s2754_s1 + $0x18] sm:$0xff]   ;;  %v2055_v22 = vld [vmem:[%s2754_s1 + $0x10] sm:$0xff]   ;;  %s2698_s8 = scalar_lea.hbm %s2756_s3, %s1750_s29  ;;  %s2239_s10 = smov [#allocation2]  }
  0x1b   : > { %1754 = vmatpush3.bf16.msra.mxu0 %v2039_v6  ;;  %v2048_v15 = vld [vmem:[%s2754_s1 + $0xa0] sm:$0xff]   ;;  %v2052_v19 = vld [vmem:[%s2754_s1 + $0x98] sm:$0xff]   ;;  %v2056_v23 = vld [vmem:[%s2754_s1 + $0x90] sm:$0xff]   ;;  %s2165_s12 = sshll.u32 %s2239_s10, 4  ;;  %s2166_s12 = int_to_ptr.vmem [resolvable:$false] %s2165_s12 }
  0x1c   : > { %1866 = vmatpush3.bf16.msra.mxu1 %v2040_v7  ;;  %1755 = vmatprep.subr.bf16.mxu0 %v2041_v8  ;;  %v2057_v24 = vld [vmem:[%s2754_s1 + $0x48] sm:$0xff]   ;;  %v2061_v28 = vld [vmem:[%s2754_s1 + $0x40] sm:$0xff]   ;;  %s2167_s13 = scalar_lea.vmem %s2166_s12, 8192 }
  0x1d   : > { %1867 = vmatprep.subr.bf16.mxu1 %v2042_v9  ;;  %v2058_v25 = vld [vmem:[%s2754_s1 + $0xc8] sm:$0xff]   ;;  %v2062_v29 = vld [vmem:[%s2754_s1 + $0xc0] sm:$0xff]  }
  0x1e   : > { %v2059_v26 = vld [vmem:[%s2754_s1 + $0x8] sm:$0xff]   ;;  %v2063_v30 = vld [vmem:[%s2754_s1] sm:$0xff]  }
  0x1f   : > { %1756 = vmatpush3.bf16.msra.mxu0 %v2043_v10  ;;  %v2060_v27 = vld [vmem:[%s2754_s1 + $0x88] sm:$0xff]   ;;  %v2064_v31 = vld [vmem:[%s2754_s1 + $0x80] sm:$0xff]  }
  0x20   : > { %1868 = vmatpush3.bf16.msra.mxu1 %v2044_v11  ;;  %1757 = vmatprep.subr.bf16.mxu0 %v2045_v12  ;;  %v2065_v32 = vld [vmem:[%s2419_s5] ss:$16 sps:$4 sm:$0xff]   ;;  %v2067_v33 = vld [vmem:[%s2419_s5 + $0x4] ss:$16 sps:$4 sm:$0xff]   ;;  %v2068_v34 = vld [vmem:[%s2419_s5 + $0x8] ss:$16 sps:$4 sm:$0xff]  }
  0x21   : > { %1869 = vmatprep.subr.bf16.mxu1 %v2046_v13  ;;  %v2070_v35 = vld [vmem:[%s2419_s5 + $0xc] ss:$16 sps:$4 sm:$0xff]   ;;  %1012 = vmatprep.mubr.bf16.mxu0 %v2067_v33  ;;  %v2071_v36 = vld [vmem:[%s2419_s5 + $0x24] ss:$16 sps:$4 sm:$0xff]   ;;  %v2075_v38 = vld [vmem:[%s2419_s5 + $0x20] ss:$16 sps:$4 sm:$0xff]  }
  0x22   : > { %1173 = vmatprep.mubr.bf16.mxu1 %v2070_v35  ;;  %v2073_v37 = vld [vmem:[%s2419_s5 + $0x2c] ss:$16 sps:$4 sm:$0xff]   ;;  %v2076_v39 = vld [vmem:[%s2419_s5 + $0x28] ss:$16 sps:$4 sm:$0xff]   ;;  %v2077_v40 = vld [vmem:[%s2419_s5 + $0x44] ss:$16 sps:$4 sm:$0xff]  }
  0x23   : > { %1758 = vmatpush3.bf16.msra.mxu0 %v2047_v14  ;;  %v2079_v41 = vld [vmem:[%s2419_s5 + $0x4c] ss:$16 sps:$4 sm:$0xff]   ;;  %v2081_v42 = vld [vmem:[%s2419_s5 + $0x40] ss:$16 sps:$4 sm:$0xff]   ;;  %v2082_v43 = vld [vmem:[%s2419_s5 + $0x48] ss:$16 sps:$4 sm:$0xff]  }
  0x24   : > { %1870 = vmatpush3.bf16.msra.mxu1 %v2048_v15  ;;  %1759 = vmatprep.subr.bf16.mxu0 %v2049_v16  ;;  %v2083_v44 = vld [vmem:[%s2419_s5 + $0x64] ss:$16 sps:$4 sm:$0xff]   ;;  %v2085_v45 = vld [vmem:[%s2419_s5 + $0x6c] ss:$16 sps:$4 sm:$0xff]   ;;  %v2087_v46 = vld [vmem:[%s2419_s5 + $0x60] ss:$16 sps:$4 sm:$0xff]  }
  0x25   : > { %1871 = vmatprep.subr.bf16.mxu1 %v2050_v17  ;;  %v2088_v47 = vld [vmem:[%s2419_s5 + $0x68] ss:$16 sps:$4 sm:$0xff]   ;;  %v2089_v48 = vld [vmem:[%s2419_s5 + $0x84] ss:$16 sps:$4 sm:$0xff]   ;;  %v2091_v49 = vld [vmem:[%s2419_s5 + $0x8c] ss:$16 sps:$4 sm:$0xff]  }
  0x26   : > { %v2093_v50 = vld [vmem:[%s2419_s5 + $0x80] ss:$16 sps:$4 sm:$0xff]   ;;  %v2094_v51 = vld [vmem:[%s2419_s5 + $0x88] ss:$16 sps:$4 sm:$0xff]   ;;  %v2095_v52 = vld [vmem:[%s2419_s5 + $0xa4] ss:$16 sps:$4 sm:$0xff]  }
  0x27   : > { %1760 = vmatpush3.bf16.msra.mxu0 %v2051_v18  ;;  %v2097_v53 = vld [vmem:[%s2419_s5 + $0xac] ss:$16 sps:$4 sm:$0xff]   ;;  %v2099_v54 = vld [vmem:[%s2419_s5 + $0xa0] ss:$16 sps:$4 sm:$0xff]   ;;  %v2100_v55 = vld [vmem:[%s2419_s5 + $0xa8] ss:$16 sps:$4 sm:$0xff]  }
  0x28   : > { %1872 = vmatpush3.bf16.msra.mxu1 %v2052_v19  ;;  %1761 = vmatprep.subr.bf16.mxu0 %v2053_v20  ;;  %v2101_v56 = vld [vmem:[%s2419_s5 + $0xc4] ss:$16 sps:$4 sm:$0xff]   ;;  %v2103_v57 = vld [vmem:[%s2419_s5 + $0xcc] ss:$16 sps:$4 sm:$0xff]   ;;  %v2105_v58 = vld [vmem:[%s2419_s5 + $0xc0] ss:$16 sps:$4 sm:$0xff]  }
  0x29   : > { %1873 = vmatprep.subr.bf16.mxu1 %v2054_v21  ;;  %v2106_v59 = vld [vmem:[%s2419_s5 + $0xc8] ss:$16 sps:$4 sm:$0xff]   ;;  %v2107_v60 = vld [vmem:[%s2419_s5 + $0xe4] ss:$16 sps:$4 sm:$0xff]   ;;  %v2109_v61 = vld [vmem:[%s2419_s5 + $0xec] ss:$16 sps:$4 sm:$0xff]  }
  0x2a   : > { %v2111_v62 = vld [vmem:[%s2419_s5 + $0xe0] ss:$16 sps:$4 sm:$0xff]   ;;  %v2112_v63 = vld [vmem:[%s2419_s5 + $0xe8] ss:$16 sps:$4 sm:$0xff]   ;;  %v2113_v0 = vld [vmem:[%s2419_s5 + $0x104] ss:$16 sps:$4 sm:$0xff]  }
  0x2b   : > { %1762 = vmatpush3.bf16.msra.mxu0 %v2055_v22  ;;  %v2115_v1 = vld [vmem:[%s2419_s5 + $0x10c] ss:$16 sps:$4 sm:$0xff]   ;;  %v2117_v2 = vld [vmem:[%s2419_s5 + $0x100] ss:$16 sps:$4 sm:$0xff]   ;;  %v2118_v3 = vld [vmem:[%s2419_s5 + $0x108] ss:$16 sps:$4 sm:$0xff]  }
  0x2c   : > { %1874 = vmatpush3.bf16.msra.mxu1 %v2056_v23  ;;  %1763 = vmatprep.subr.bf16.mxu0 %v2057_v24  ;;  %v2119_v4 = vld [vmem:[%s2419_s5 + $0x124] ss:$16 sps:$4 sm:$0xff]   ;;  %v2121_v5 = vld [vmem:[%s2419_s5 + $0x12c] ss:$16 sps:$4 sm:$0xff]   ;;  %v2123_v6 = vld [vmem:[%s2419_s5 + $0x120] ss:$16 sps:$4 sm:$0xff]  }
  0x2d   : > { %1875 = vmatprep.subr.bf16.mxu1 %v2058_v25  ;;  %v2124_v7 = vld [vmem:[%s2419_s5 + $0x128] ss:$16 sps:$4 sm:$0xff]   ;;  %v2125_v8 = vld [vmem:[%s2419_s5 + $0x144] ss:$16 sps:$4 sm:$0xff]   ;;  %v2127_v9 = vld [vmem:[%s2419_s5 + $0x14c] ss:$16 sps:$4 sm:$0xff]  }
  0x2e   : > { %v2129_v10 = vld [vmem:[%s2419_s5 + $0x140] ss:$16 sps:$4 sm:$0xff]   ;;  %v2130_v11 = vld [vmem:[%s2419_s5 + $0x148] ss:$16 sps:$4 sm:$0xff]   ;;  %v2131_v12 = vld [vmem:[%s2419_s5 + $0x164] ss:$16 sps:$4 sm:$0xff]  }
  0x2f   : > { %1764 = vmatpush3.bf16.msra.mxu0 %v2059_v26  ;;  %v2133_v13 = vld [vmem:[%s2419_s5 + $0x16c] ss:$16 sps:$4 sm:$0xff]   ;;  %v2135_v14 = vld [vmem:[%s2419_s5 + $0x160] ss:$16 sps:$4 sm:$0xff]   ;;  %v2136_v15 = vld [vmem:[%s2419_s5 + $0x168] ss:$16 sps:$4 sm:$0xff]  }
  0x30   : > { %1876 = vmatpush3.bf16.msra.mxu1 %v2060_v27  ;;  %1765 = vmatprep.subr.bf16.mxu0 %v2061_v28  ;;  %v2137_v16 = vld [vmem:[%s2419_s5 + $0x184] ss:$16 sps:$4 sm:$0xff]   ;;  %v2139_v17 = vld [vmem:[%s2419_s5 + $0x18c] ss:$16 sps:$4 sm:$0xff]   ;;  %v2141_v18 = vld [vmem:[%s2419_s5 + $0x180] ss:$16 sps:$4 sm:$0xff]  }
  0x31   : > { %1877 = vmatprep.subr.bf16.mxu1 %v2062_v29  ;;  %v2142_v19 = vld [vmem:[%s2419_s5 + $0x188] ss:$16 sps:$4 sm:$0xff]   ;;  %v2143_v20 = vld [vmem:[%s2419_s5 + $0x1a4] ss:$16 sps:$4 sm:$0xff]   ;;  %v2145_v21 = vld [vmem:[%s2419_s5 + $0x1ac] ss:$16 sps:$4 sm:$0xff]  }
  0x32   : > { %v2147_v22 = vld [vmem:[%s2419_s5 + $0x1a0] ss:$16 sps:$4 sm:$0xff]   ;;  %v2148_v23 = vld [vmem:[%s2419_s5 + $0x1a8] ss:$16 sps:$4 sm:$0xff]   ;;  %v2149_v24 = vld [vmem:[%s2419_s5 + $0x1c4] ss:$16 sps:$4 sm:$0xff]  }
  0x33   : > { %1766 = vmatpush3.bf16.msra.mxu0 %v2063_v30  ;;  %v2151_v25 = vld [vmem:[%s2419_s5 + $0x1cc] ss:$16 sps:$4 sm:$0xff]   ;;  %v2153_v26 = vld [vmem:[%s2419_s5 + $0x1c0] ss:$16 sps:$4 sm:$0xff]   ;;  %v2154_v27 = vld [vmem:[%s2419_s5 + $0x1c8] ss:$16 sps:$4 sm:$0xff]  }
  0x34   : > { %1878 = vmatpush3.bf16.msra.mxu1 %v2064_v31  ;;  %v2155_v28 = vld [vmem:[%s2419_s5 + $0x1e4] ss:$16 sps:$4 sm:$0xff]   ;;  %v2157_v29 = vld [vmem:[%s2419_s5 + $0x1ec] ss:$16 sps:$4 sm:$0xff]   ;;  %v2159_v30 = vld [vmem:[%s2419_s5 + $0x1e0] ss:$16 sps:$4 sm:$0xff]  }
  0x35   : > { %v2160_v31 = vld [vmem:[%s2419_s5 + $0x1e8] ss:$16 sps:$4 sm:$0xff]   ;;  %s1516_s5 = sshll.u32 %s2602_s30, 4  ;;  %s2700_s5 = int_to_ptr.vmem [resolvable:$true] %s1516_s5 }
  0x36   : > { %1013 = vmatmul.mubr.bf16.vlgmr.msra.gmra.mxu0 %v2065_v32  ;;  %s2161_s9 = scalar_lea.vmem %s2700_s5, 4096  ;;  %p2168_p1 = scmp.lt.s32.totalorder %s2700_s5, %s2166_s12 }
  0x37   : > { %1174 = vmatmul.mubr.bf16.vlgmr.msra.gmra.mxu1 %v2068_v34  ;;  %1020 = vmatprep.mubr.bf16.mxu0 %v2071_v36  ;;  %p2162_p12 = scmp.ne.s32.totalorder %s2700_s5, %s2161_s9  ;;  %p2169_p2 = scmp.lt.s32.totalorder %s2167_s13, %s2161_s9 }
  0x38   : > { %1181 = vmatprep.mubr.bf16.mxu1 %v2073_v37 }
  0x39   : > { %p2163_p13 = pnand %p2162_p12, %p2307_p4  ;;  %p2170_p3 = por %p2169_p2, %p2168_p1 }
  0x3b   : > { %p2164_p0 = pneg %p2163_p13 }
  0x3d   : > { %p2171_p5 = pnand %p2170_p3, %p2164_p0 }
  0x3e   : > { %1021 = vmatmul.mubr.bf16.gmra.mxu0 %v2075_v38 }
  0x3f   : > { %1182 = vmatmul.mubr.bf16.gmra.mxu1 %v2076_v39  ;;  %1028 = vmatprep.mubr.bf16.mxu0 %v2077_v40 }
  0x40   : > { %1189 = vmatprep.mubr.bf16.mxu1 %v2079_v41  ;;  %v1369_v41 = vld [vmem:[%s2498_s14] sm:$0xff] }
  0x46   : > { %1029 = vmatmul.mubr.bf16.gmra.mxu0 %v2081_v42 }
  0x47   : > { %1190 = vmatmul.mubr.bf16.gmra.mxu1 %v2082_v43  ;;  %1036 = vmatprep.mubr.bf16.mxu0 %v2083_v44 }
  0x48   : > { %1197 = vmatprep.mubr.bf16.mxu1 %v2085_v45  ;;  %v1370_v45 = vld [vmem:[%s2498_s14 + $0x8] sm:$0xff] }
  0x4e   : > { %1037 = vmatmul.mubr.bf16.gmra.mxu0 %v2087_v46  ;;  %v1371_v46 = vld [vmem:[%s2498_s14 + $0x10] sm:$0xff] }
  0x4f   : > { %1198 = vmatmul.mubr.bf16.gmra.mxu1 %v2088_v47  ;;  %1044 = vmatprep.mubr.bf16.mxu0 %v2089_v48  ;;  %v2508_v47 = vld [vmem:[%s2498_s14 + $0x18] sm:$0xff]  ;;  %v2511_v48 = vld [vmem:[%s2498_s14 + $0x20] sm:$0xff] }
  0x50   : > { %1205 = vmatprep.mubr.bf16.mxu1 %v2091_v49  ;;  %v2514_v49 = vld [vmem:[%s2498_s14 + $0x28] sm:$0xff] }
  0x56   : > { %1045 = vmatmul.mubr.bf16.gmra.mxu0 %v2093_v50  ;;  %v2517_v50 = vld [vmem:[%s2498_s14 + $0x30] sm:$0xff] }
  0x57   : > { %1206 = vmatmul.mubr.bf16.gmra.mxu1 %v2094_v51  ;;  %1052 = vmatprep.mubr.bf16.mxu0 %v2095_v52  ;;  %v2520_v51 = vld [vmem:[%s2498_s14 + $0x38] sm:$0xff]  ;;  %v2523_v52 = vld [vmem:[%s2498_s14 + $0x40] sm:$0xff] }
  0x58   : > { %1213 = vmatprep.mubr.bf16.mxu1 %v2097_v53  ;;  %v2526_v53 = vld [vmem:[%s2498_s14 + $0x48] sm:$0xff] }
  0x5e   : > { %1053 = vmatmul.mubr.bf16.gmra.mxu0 %v2099_v54  ;;  %v2529_v54 = vld [vmem:[%s2498_s14 + $0x50] sm:$0xff] }
  0x5f   : > { %1214 = vmatmul.mubr.bf16.gmra.mxu1 %v2100_v55  ;;  %1060 = vmatprep.mubr.bf16.mxu0 %v2101_v56  ;;  %v2532_v55 = vld [vmem:[%s2498_s14 + $0x58] sm:$0xff]  ;;  %v2535_v56 = vld [vmem:[%s2498_s14 + $0x60] sm:$0xff] }
  0x60   : > { %1221 = vmatprep.mubr.bf16.mxu1 %v2103_v57  ;;  %v2538_v57 = vld [vmem:[%s2498_s14 + $0x68] sm:$0xff] }
  0x66   : > { %1061 = vmatmul.mubr.bf16.gmra.mxu0 %v2105_v58  ;;  %v2541_v58 = vld [vmem:[%s2498_s14 + $0x70] sm:$0xff] }
  0x67   : > { %1222 = vmatmul.mubr.bf16.gmra.mxu1 %v2106_v59  ;;  %1068 = vmatprep.mubr.bf16.mxu0 %v2107_v60  ;;  %v2544_v59 = vld [vmem:[%s2498_s14 + $0x78] sm:$0xff]  ;;  %v2547_v60 = vld [vmem:[%s2498_s14 + $0x80] sm:$0xff] }
  0x68   : > { %1229 = vmatprep.mubr.bf16.mxu1 %v2109_v61  ;;  %v2550_v61 = vld [vmem:[%s2498_s14 + $0x88] sm:$0xff] }
  0x6e   : > { %1069 = vmatmul.mubr.bf16.gmra.mxu0 %v2111_v62  ;;  %v2553_v62 = vld [vmem:[%s2498_s14 + $0x90] sm:$0xff] }
  0x6f   : > { %1230 = vmatmul.mubr.bf16.gmra.mxu1 %v2112_v63  ;;  %1076 = vmatprep.mubr.bf16.mxu0 %v2113_v0  ;;  %v2556_v63 = vld [vmem:[%s2498_s14 + $0x98] sm:$0xff]  ;;  %v2559_v0 = vld [vmem:[%s2498_s14 + $0xa0] sm:$0xff] }
  0x70   : > { %1237 = vmatprep.mubr.bf16.mxu1 %v2115_v1  ;;  %v2562_v1 = vld [vmem:[%s2498_s14 + $0xa8] sm:$0xff] }
  0x76   : > { %1077 = vmatmul.mubr.bf16.gmra.mxu0 %v2117_v2  ;;  %v2565_v2 = vld [vmem:[%s2498_s14 + $0xb0] sm:$0xff] }
  0x77   : > { %1238 = vmatmul.mubr.bf16.gmra.mxu1 %v2118_v3  ;;  %1084 = vmatprep.mubr.bf16.mxu0 %v2119_v4  ;;  %v2568_v3 = vld [vmem:[%s2498_s14 + $0xb8] sm:$0xff]  ;;  %v2571_v4 = vld [vmem:[%s2498_s14 + $0xc0] sm:$0xff] }
  0x78   : > { %1245 = vmatprep.mubr.bf16.mxu1 %v2121_v5  ;;  %v2574_v5 = vld [vmem:[%s2498_s14 + $0xc8] sm:$0xff] }
  0x7e   : > { %1085 = vmatmul.mubr.bf16.gmra.mxu0 %v2123_v6 }
  0x7f   : > { %1246 = vmatmul.mubr.bf16.gmra.mxu1 %v2124_v7  ;;  %1092 = vmatprep.mubr.bf16.mxu0 %v2125_v8  ;;  %v2577_v8 = vld [vmem:[%s2498_s14 + $0xd0] sm:$0xff] }
  0x80   : > { %1253 = vmatprep.mubr.bf16.mxu1 %v2127_v9  ;;  %v2580_v9 = vld [vmem:[%s2498_s14 + $0xd8] sm:$0xff] }
  0x86   : > { %1093 = vmatmul.mubr.bf16.gmra.mxu0 %v2129_v10  ;;  %v2583_v10 = vld [vmem:[%s2498_s14 + $0xe0] sm:$0xff] }
  0x87   : > { %1254 = vmatmul.mubr.bf16.gmra.mxu1 %v2130_v11  ;;  %1100 = vmatprep.mubr.bf16.mxu0 %v2131_v12  ;;  %v2593_v12 = vld [vmem:[%s2498_s14 + $0xe8] sm:$0xff] }
  0x88   : > { %1261 = vmatprep.mubr.bf16.mxu1 %v2133_v13  ;;  %v2596_v13 = vld [vmem:[%s2498_s14 + $0xf0] sm:$0xff] }
  0x8e   : > { %1101 = vmatmul.mubr.bf16.gmra.mxu0 %v2135_v14  ;;  %v2599_v14 = vld [vmem:[%s2498_s14 + $0xf8] sm:$0xff] }
  0x8f   : > { %1262 = vmatmul.mubr.bf16.gmra.mxu1 %v2136_v15  ;;  %1108 = vmatprep.mubr.bf16.mxu0 %v2137_v16 }
  0x90   : > { %1269 = vmatprep.mubr.bf16.mxu1 %v2139_v17 }
  0x96   : > { %1109 = vmatmul.mubr.bf16.gmra.mxu0 %v2141_v18 }
  0x97   : > { %1270 = vmatmul.mubr.bf16.gmra.mxu1 %v2142_v19  ;;  %1116 = vmatprep.mubr.bf16.mxu0 %v2143_v20 }
  0x98   : > { %1277 = vmatprep.mubr.bf16.mxu1 %v2145_v21 }
  0x9e   : > { %1117 = vmatmul.mubr.bf16.gmra.mxu0 %v2147_v22 }
  0x9f   : > { %1278 = vmatmul.mubr.bf16.gmra.mxu1 %v2148_v23  ;;  %1124 = vmatprep.mubr.bf16.mxu0 %v2149_v24 }
  0xa0   : > { %1285 = vmatprep.mubr.bf16.mxu1 %v2151_v25 }
  0xa6   : > { %1125 = vmatmul.mubr.bf16.gmra.mxu0 %v2153_v26 }
  0xa7   : > { %1286 = vmatmul.mubr.bf16.gmra.mxu1 %v2154_v27  ;;  %1132 = vmatprep.mubr.bf16.mxu0 %v2155_v28 }
  0xa8   : > { %1293 = vmatprep.mubr.bf16.mxu1 %v2157_v29 }
  0xae   : > { %1133 = vmatmul.mubr.bf16.gmra.mxu0 %v2159_v30 }
  0xaf   : > { %1294 = vmatmul.mubr.bf16.gmra.mxu1 %v2160_v31 }
  0xf6   : > { %v1767_v32 = vpop.f32.mrf.mxu0 }
  0xf7   : > { %v1879_v33 = vpop.f32.mrf.mxu1 }
  0xf8   : > { %v1768_v34 = vpop.f32.mrf.mxu0 }
  0xf9   : > { %v1769_v35 = vadd.f32 %v1768_v34, %v1767_v32  ;;  %v1880_v36 = vpop.f32.mrf.mxu1 }
  0xfa   : > { %v1881_v37 = vadd.f32 %v1880_v36, %v1879_v33  ;;  %v1770_v38 = vpop.f32.mrf.mxu0 }
  0xfb   : > { %v1882_v39 = vpop.f32.mrf.mxu1 }
  0xfc   : > { %v1176_v40 = vadd.f32 %v1881_v37, %v1769_v35  ;;  %v1771_v42 = vpop.f32.mrf.mxu0 }
  0xfd   : > { %v1772_v43 = vadd.f32 %v1771_v42, %v1770_v38  ;;  %v1883_v44 = vpop.f32.mrf.mxu1 }
  0xfe   : > { %v1884_v6 = vadd.f32 %v1883_v44, %v1882_v39  ;;  %v1773_v7 = vpop.f32.mrf.mxu0  ;;  %1334 = vst [vmem:[%s2602_s30] sm:$0xff] %v1176_v40  ;;  %v1433_v15 = vadd.f32 %v1369_v41, %v1176_v40 }
  0xff   : > { %v1885_v11 = vpop.f32.mrf.mxu1 }
 0x100   : > { %v1179_v16 = vadd.f32 %v1884_v6, %v1772_v43  ;;  %v1774_v17 = vpop.f32.mrf.mxu0  ;;  %1465 = vst [vmem:[%s2590_s26] sm:$0xff] %v1433_v15 }
 0x101   : > { %v1775_v18 = vadd.f32 %v1774_v17, %v1773_v7  ;;  %v1886_v19 = vpop.f32.mrf.mxu1 }
 0x102   : > { %v1887_v20 = vadd.f32 %v1886_v19, %v1885_v11  ;;  %v1776_v21 = vpop.f32.mrf.mxu0  ;;  %1335 = vst [vmem:[%s2602_s30 + $0x8] sm:$0xff] %v1179_v16  ;;  %v1434_v23 = vadd.f32 %v1370_v45, %v1179_v16 }
 0x103   : > { %v1888_v22 = vpop.f32.mrf.mxu1 }
 0x104   : > { %v1184_v24 = vadd.f32 %v1887_v20, %v1775_v18  ;;  %v1777_v25 = vpop.f32.mrf.mxu0  ;;  %1466 = vst [vmem:[%s2590_s26 + $0x8] sm:$0xff] %v1434_v23 }
 0x105   : > { %v1778_v26 = vadd.f32 %v1777_v25, %v1776_v21  ;;  %v1889_v27 = vpop.f32.mrf.mxu1 }
 0x106   : > { %v1890_v28 = vadd.f32 %v1889_v27, %v1888_v22  ;;  %v1779_v29 = vpop.f32.mrf.mxu0  ;;  %1336 = vst [vmem:[%s2602_s30 + $0x10] sm:$0xff] %v1184_v24  ;;  %v1435_v31 = vadd.f32 %v1371_v46, %v1184_v24 }
 0x107   : > { %v1891_v30 = vpop.f32.mrf.mxu1 }
 0x108   : > { %v1187_v32 = vadd.f32 %v1890_v28, %v1778_v26  ;;  %v1780_v33 = vpop.f32.mrf.mxu0  ;;  %1467 = vst [vmem:[%s2590_s26 + $0x10] sm:$0xff] %v1435_v31 }
 0x109   : > { %v1781_v34 = vadd.f32 %v1780_v33, %v1779_v29  ;;  %v1892_v35 = vpop.f32.mrf.mxu1 }
 0x10a   : > { %v1893_v36 = vadd.f32 %v1892_v35, %v1891_v30  ;;  %v1782_v37 = vpop.f32.mrf.mxu0  ;;  %1337 = vst [vmem:[%s2602_s30 + $0x18] sm:$0xff] %v1187_v32  ;;  %v1436_v39 = vadd.f32 %v2508_v47, %v1187_v32 }
 0x10b   : > { %v1894_v38 = vpop.f32.mrf.mxu1 }
 0x10c   : > { %v1192_v40 = vadd.f32 %v1893_v36, %v1781_v34  ;;  %v1783_v41 = vpop.f32.mrf.mxu0  ;;  %1468 = vst [vmem:[%s2590_s26 + $0x18] sm:$0xff] %v1436_v39 }
 0x10d   : > { %v1784_v42 = vadd.f32 %v1783_v41, %v1782_v37  ;;  %v1895_v43 = vpop.f32.mrf.mxu1 }
 0x10e   : > { %v1896_v44 = vadd.f32 %v1895_v43, %v1894_v38  ;;  %v1785_v45 = vpop.f32.mrf.mxu0  ;;  %1338 = vst [vmem:[%s2602_s30 + $0x20] sm:$0xff] %v1192_v40  ;;  %v1437_v6 = vadd.f32 %v2511_v48, %v1192_v40 }
 0x10f   : > { %v1897_v46 = vpop.f32.mrf.mxu1 }
 0x110   : > { %v1195_v7 = vadd.f32 %v1896_v44, %v1784_v42  ;;  %v1786_v11 = vpop.f32.mrf.mxu0  ;;  %1469 = vst [vmem:[%s2590_s26 + $0x20] sm:$0xff] %v1437_v6 }
 0x111   : > { %v1787_v15 = vadd.f32 %v1786_v11, %v1785_v45  ;;  %v1898_v16 = vpop.f32.mrf.mxu1 }
 0x112   : > { %v1899_v47 = vadd.f32 %v1898_v16, %v1897_v46  ;;  %v1788_v17 = vpop.f32.mrf.mxu0  ;;  %1339 = vst [vmem:[%s2602_s30 + $0x28] sm:$0xff] %v1195_v7  ;;  %v1438_v19 = vadd.f32 %v2514_v49, %v1195_v7 }
 0x113   : > { %v1900_v18 = vpop.f32.mrf.mxu1 }
 0x114   : > { %v1200_v20 = vadd.f32 %v1899_v47, %v1787_v15  ;;  %v1789_v21 = vpop.f32.mrf.mxu0  ;;  %1470 = vst [vmem:[%s2590_s26 + $0x28] sm:$0xff] %v1438_v19 }
 0x115   : > { %v1790_v22 = vadd.f32 %v1789_v21, %v1788_v17  ;;  %v1901_v23 = vpop.f32.mrf.mxu1 }
 0x116   : > { %v1902_v48 = vadd.f32 %v1901_v23, %v1900_v18  ;;  %v1791_v24 = vpop.f32.mrf.mxu0  ;;  %1340 = vst [vmem:[%s2602_s30 + $0x30] sm:$0xff] %v1200_v20  ;;  %v1439_v26 = vadd.f32 %v2517_v50, %v1200_v20 }
 0x117   : > { %v1903_v25 = vpop.f32.mrf.mxu1 }
 0x118   : > { %v1203_v27 = vadd.f32 %v1902_v48, %v1790_v22  ;;  %v1792_v28 = vpop.f32.mrf.mxu0  ;;  %1471 = vst [vmem:[%s2590_s26 + $0x30] sm:$0xff] %v1439_v26 }
 0x119   : > { %v1793_v29 = vadd.f32 %v1792_v28, %v1791_v24  ;;  %v1904_v30 = vpop.f32.mrf.mxu1 }
 0x11a   : > { %v1905_v49 = vadd.f32 %v1904_v30, %v1903_v25  ;;  %v1794_v31 = vpop.f32.mrf.mxu0  ;;  %1341 = vst [vmem:[%s2602_s30 + $0x38] sm:$0xff] %v1203_v27  ;;  %v1440_v33 = vadd.f32 %v2520_v51, %v1203_v27 }
 0x11b   : > { %v1906_v32 = vpop.f32.mrf.mxu1 }
 0x11c   : > { %v1208_v34 = vadd.f32 %v1905_v49, %v1793_v29  ;;  %v1795_v35 = vpop.f32.mrf.mxu0  ;;  %1472 = vst [vmem:[%s2590_s26 + $0x38] sm:$0xff] %v1440_v33 }
 0x11d   : > { %v1796_v36 = vadd.f32 %v1795_v35, %v1794_v31  ;;  %v1907_v37 = vpop.f32.mrf.mxu1 }
 0x11e   : > { %v1908_v50 = vadd.f32 %v1907_v37, %v1906_v32  ;;  %v1797_v38 = vpop.f32.mrf.mxu0  ;;  %1342 = vst [vmem:[%s2602_s30 + $0x40] sm:$0xff] %v1208_v34  ;;  %v1441_v40 = vadd.f32 %v2523_v52, %v1208_v34 }
 0x11f   : > { %v1909_v39 = vpop.f32.mrf.mxu1 }
 0x120   : > { %v1211_v41 = vadd.f32 %v1908_v50, %v1796_v36  ;;  %v1798_v42 = vpop.f32.mrf.mxu0  ;;  %1473 = vst [vmem:[%s2590_s26 + $0x40] sm:$0xff] %v1441_v40 }
 0x121   : > { %v1799_v43 = vadd.f32 %v1798_v42, %v1797_v38  ;;  %v1910_v44 = vpop.f32.mrf.mxu1 }
 0x122   : > { %v1911_v51 = vadd.f32 %v1910_v44, %v1909_v39  ;;  %v1800_v45 = vpop.f32.mrf.mxu0  ;;  %1343 = vst [vmem:[%s2602_s30 + $0x48] sm:$0xff] %v1211_v41  ;;  %v1442_v6 = vadd.f32 %v2526_v53, %v1211_v41 }
 0x123   : > { %v1912_v46 = vpop.f32.mrf.mxu1 }
 0x124   : > { %v1216_v7 = vadd.f32 %v1911_v51, %v1799_v43  ;;  %v1801_v11 = vpop.f32.mrf.mxu0  ;;  %1474 = vst [vmem:[%s2590_s26 + $0x48] sm:$0xff] %v1442_v6 }
 0x125   : > { %v1802_v15 = vadd.f32 %v1801_v11, %v1800_v45  ;;  %v1913_v16 = vpop.f32.mrf.mxu1 }
 0x126   : > { %v1914_v52 = vadd.f32 %v1913_v16, %v1912_v46  ;;  %v1803_v47 = vpop.f32.mrf.mxu0  ;;  %1344 = vst [vmem:[%s2602_s30 + $0x50] sm:$0xff] %v1216_v7  ;;  %v1443_v18 = vadd.f32 %v2529_v54, %v1216_v7 }
 0x127   : > { %v1915_v17 = vpop.f32.mrf.mxu1 }
 0x128   : > { %v1219_v19 = vadd.f32 %v1914_v52, %v1802_v15  ;;  %v1804_v20 = vpop.f32.mrf.mxu0  ;;  %1475 = vst [vmem:[%s2590_s26 + $0x50] sm:$0xff] %v1443_v18 }
 0x129   : > { %v1805_v21 = vadd.f32 %v1804_v20, %v1803_v47  ;;  %v1916_v22 = vpop.f32.mrf.mxu1 }
 0x12a   : > { %v1917_v53 = vadd.f32 %v1916_v22, %v1915_v17  ;;  %v1806_v23 = vpop.f32.mrf.mxu0  ;;  %1345 = vst [vmem:[%s2602_s30 + $0x58] sm:$0xff] %v1219_v19  ;;  %v1444_v24 = vadd.f32 %v2532_v55, %v1219_v19 }
 0x12b   : > { %v1918_v48 = vpop.f32.mrf.mxu1 }
 0x12c   : > { %v1224_v25 = vadd.f32 %v1917_v53, %v1805_v21  ;;  %v1807_v26 = vpop.f32.mrf.mxu0  ;;  %1476 = vst [vmem:[%s2590_s26 + $0x58] sm:$0xff] %v1444_v24 }
 0x12d   : > { %v1808_v27 = vadd.f32 %v1807_v26, %v1806_v23  ;;  %v1919_v28 = vpop.f32.mrf.mxu1 }
 0x12e   : > { %v1920_v54 = vadd.f32 %v1919_v28, %v1918_v48  ;;  %v1809_v29 = vpop.f32.mrf.mxu0  ;;  %1346 = vst [vmem:[%s2602_s30 + $0x60] sm:$0xff] %v1224_v25  ;;  %v1445_v49 = vadd.f32 %v2535_v56, %v1224_v25 }
 0x12f   : > { %v1921_v30 = vpop.f32.mrf.mxu1 }
 0x130   : > { %v1227_v31 = vadd.f32 %v1920_v54, %v1808_v27  ;;  %v1810_v32 = vpop.f32.mrf.mxu0  ;;  %1477 = vst [vmem:[%s2590_s26 + $0x60] sm:$0xff] %v1445_v49 }
 0x131   : > { %v1811_v33 = vadd.f32 %v1810_v32, %v1809_v29  ;;  %v1922_v34 = vpop.f32.mrf.mxu1 }
 0x132   : > { %v1923_v55 = vadd.f32 %v1922_v34, %v1921_v30  ;;  %v1812_v35 = vpop.f32.mrf.mxu0  ;;  %1347 = vst [vmem:[%s2602_s30 + $0x68] sm:$0xff] %v1227_v31  ;;  %v1446_v37 = vadd.f32 %v2538_v57, %v1227_v31 }
 0x133   : > { %v1924_v36 = vpop.f32.mrf.mxu1 }
 0x134   : > { %v1232_v50 = vadd.f32 %v1923_v55, %v1811_v33  ;;  %v1813_v38 = vpop.f32.mrf.mxu0  ;;  %1478 = vst [vmem:[%s2590_s26 + $0x68] sm:$0xff] %v1446_v37 }
 0x135   : > { %v1814_v39 = vadd.f32 %v1813_v38, %v1812_v35  ;;  %v1925_v40 = vpop.f32.mrf.mxu1 }
 0x136   : > { %v1926_v56 = vadd.f32 %v1925_v40, %v1924_v36  ;;  %v1815_v41 = vpop.f32.mrf.mxu0  ;;  %1348 = vst [vmem:[%s2602_s30 + $0x70] sm:$0xff] %v1232_v50  ;;  %v1447_v43 = vadd.f32 %v2541_v58, %v1232_v50 }
 0x137   : > { %v1927_v42 = vpop.f32.mrf.mxu1 }
 0x138   : > { %v1235_v44 = vadd.f32 %v1926_v56, %v1814_v39  ;;  %v1816_v51 = vpop.f32.mrf.mxu0  ;;  %1479 = vst [vmem:[%s2590_s26 + $0x70] sm:$0xff] %v1447_v43 }
 0x139   : > { %v1817_v45 = vadd.f32 %v1816_v51, %v1815_v41  ;;  %v1928_v46 = vpop.f32.mrf.mxu1 }
 0x13a   : > { %v1929_v57 = vadd.f32 %v1928_v46, %v1927_v42  ;;  %v1818_v6 = vpop.f32.mrf.mxu0  ;;  %1349 = vst [vmem:[%s2602_s30 + $0x78] sm:$0xff] %v1235_v44  ;;  %v1448_v11 = vadd.f32 %v2544_v59, %v1235_v44 }
 0x13b   : > { %v1930_v7 = vpop.f32.mrf.mxu1 }
 0x13c   : > { %v1240_v15 = vadd.f32 %v1929_v57, %v1817_v45  ;;  %v1819_v16 = vpop.f32.mrf.mxu0  ;;  %1480 = vst [vmem:[%s2590_s26 + $0x78] sm:$0xff] %v1448_v11 }
 0x13d   : > { %v1820_v52 = vadd.f32 %v1819_v16, %v1818_v6  ;;  %v1931_v47 = vpop.f32.mrf.mxu1 }
 0x13e   : > { %v1932_v58 = vadd.f32 %v1931_v47, %v1930_v7  ;;  %v1821_v17 = vpop.f32.mrf.mxu0  ;;  %1350 = vst [vmem:[%s2602_s30 + $0x80] sm:$0xff] %v1240_v15  ;;  %v1449_v19 = vadd.f32 %v2547_v60, %v1240_v15 }
 0x13f   : > { %v1933_v18 = vpop.f32.mrf.mxu1 }
 0x140   : > { %v1243_v20 = vadd.f32 %v1932_v58, %v1820_v52  ;;  %v1822_v21 = vpop.f32.mrf.mxu0  ;;  %1481 = vst [vmem:[%s2590_s26 + $0x80] sm:$0xff] %v1449_v19 }
 0x141   : > { %v1823_v22 = vadd.f32 %v1822_v21, %v1821_v17  ;;  %v1934_v53 = vpop.f32.mrf.mxu1 }
 0x142   : > { %v1935_v59 = vadd.f32 %v1934_v53, %v1933_v18  ;;  %v1824_v23 = vpop.f32.mrf.mxu0  ;;  %1351 = vst [vmem:[%s2602_s30 + $0x88] sm:$0xff] %v1243_v20  ;;  %v1450_v24 = vadd.f32 %v2550_v61, %v1243_v20 }
 0x143   : > { %v1936_v48 = vpop.f32.mrf.mxu1 }
 0x144   : > { %v1248_v25 = vadd.f32 %v1935_v59, %v1823_v22  ;;  %v1825_v26 = vpop.f32.mrf.mxu0  ;;  %1482 = vst [vmem:[%s2590_s26 + $0x88] sm:$0xff] %v1450_v24 }
 0x145   : > { %v1826_v27 = vadd.f32 %v1825_v26, %v1824_v23  ;;  %v1937_v28 = vpop.f32.mrf.mxu1 }
 0x146   : > { %v1938_v60 = vadd.f32 %v1937_v28, %v1936_v48  ;;  %v1827_v54 = vpop.f32.mrf.mxu0  ;;  %1352 = vst [vmem:[%s2602_s30 + $0x90] sm:$0xff] %v1248_v25  ;;  %v1451_v30 = vadd.f32 %v2553_v62, %v1248_v25 }
 0x147   : > { %v1939_v29 = vpop.f32.mrf.mxu1 }
 0x148   : > { %v1251_v49 = vadd.f32 %v1938_v60, %v1826_v27  ;;  %v1828_v31 = vpop.f32.mrf.mxu0  ;;  %1483 = vst [vmem:[%s2590_s26 + $0x90] sm:$0xff] %v1451_v30 }
 0x149   : > { %v1829_v32 = vadd.f32 %v1828_v31, %v1827_v54  ;;  %v1940_v33 = vpop.f32.mrf.mxu1 }
 0x14a   : > { %v1941_v61 = vadd.f32 %v1940_v33, %v1939_v29  ;;  %v1830_v34 = vpop.f32.mrf.mxu0  ;;  %1353 = vst [vmem:[%s2602_s30 + $0x98] sm:$0xff] %v1251_v49  ;;  %v1452_v35 = vadd.f32 %v2556_v63, %v1251_v49 }
 0x14b   : > { %v1942_v55 = vpop.f32.mrf.mxu1 }
 0x14c   : > { %v1256_v36 = vadd.f32 %v1941_v61, %v1829_v32  ;;  %v1831_v37 = vpop.f32.mrf.mxu0  ;;  %1484 = vst [vmem:[%s2590_s26 + $0x98] sm:$0xff] %v1452_v35 }
 0x14d   : > { %v1832_v50 = vadd.f32 %v1831_v37, %v1830_v34  ;;  %v1943_v38 = vpop.f32.mrf.mxu1 }
 0x14e   : > { %v1944_v62 = vadd.f32 %v1943_v38, %v1942_v55  ;;  %v1833_v39 = vpop.f32.mrf.mxu0  ;;  %1354 = vst [vmem:[%s2602_s30 + $0xa0] sm:$0xff] %v1256_v36  ;;  %v1453_v56 = vadd.f32 %v2559_v0, %v1256_v36 }
 0x14f   : > { %v1945_v40 = vpop.f32.mrf.mxu1 }
 0x150   : > { %v1259_v41 = vadd.f32 %v1944_v62, %v1832_v50  ;;  %v1834_v42 = vpop.f32.mrf.mxu0  ;;  %1485 = vst [vmem:[%s2590_s26 + $0xa0] sm:$0xff] %v1453_v56 }
 0x151   : > { %v1835_v43 = vadd.f32 %v1834_v42, %v1833_v39  ;;  %v1946_v44 = vpop.f32.mrf.mxu1 }
 0x152   : > { %v1947_v63 = vadd.f32 %v1946_v44, %v1945_v40  ;;  %v1836_v51 = vpop.f32.mrf.mxu0  ;;  %1355 = vst [vmem:[%s2602_s30 + $0xa8] sm:$0xff] %v1259_v41  ;;  %v1454_v46 = vadd.f32 %v2562_v1, %v1259_v41 }
 0x153   : > { %v1948_v45 = vpop.f32.mrf.mxu1 }
 0x154   : > { %v1264_v57 = vadd.f32 %v1947_v63, %v1835_v43  ;;  %v1837_v6 = vpop.f32.mrf.mxu0  ;;  %1486 = vst [vmem:[%s2590_s26 + $0xa8] sm:$0xff] %v1454_v46 }
 0x155   : > { %v1838_v7 = vadd.f32 %v1837_v6, %v1836_v51  ;;  %v1949_v11 = vpop.f32.mrf.mxu1 }
 0x156   : > { %v1950_v0 = vadd.f32 %v1949_v11, %v1948_v45  ;;  %v1839_v15 = vpop.f32.mrf.mxu0  ;;  %1356 = vst [vmem:[%s2602_s30 + $0xb0] sm:$0xff] %v1264_v57  ;;  %v1455_v52 = vadd.f32 %v2565_v2, %v1264_v57 }
 0x157   : > { %v1951_v16 = vpop.f32.mrf.mxu1 }
 0x158   : > { %v1267_v47 = vadd.f32 %v1950_v0, %v1838_v7  ;;  %v1840_v58 = vpop.f32.mrf.mxu0  ;;  %1487 = vst [vmem:[%s2590_s26 + $0xb0] sm:$0xff] %v1455_v52 }
 0x159   : > { %v1841_v17 = vadd.f32 %v1840_v58, %v1839_v15  ;;  %v1952_v18 = vpop.f32.mrf.mxu1 }
 0x15a   : > { %v1953_v1 = vadd.f32 %v1952_v18, %v1951_v16  ;;  %v1842_v19 = vpop.f32.mrf.mxu0  ;;  %1357 = vst [vmem:[%s2602_s30 + $0xb8] sm:$0xff] %v1267_v47  ;;  %v1456_v21 = vadd.f32 %v2568_v3, %v1267_v47 }
 0x15b   : > { %v1954_v20 = vpop.f32.mrf.mxu1 }
 0x15c   : > { %v1272_v22 = vadd.f32 %v1953_v1, %v1841_v17  ;;  %v1843_v53 = vpop.f32.mrf.mxu0  ;;  %1488 = vst [vmem:[%s2590_s26 + $0xb8] sm:$0xff] %v1456_v21 }
 0x15d   : > { %v1844_v59 = vadd.f32 %v1843_v53, %v1842_v19  ;;  %v1955_v23 = vpop.f32.mrf.mxu1 }
 0x15e   : > { %v1956_v2 = vadd.f32 %v1955_v23, %v1954_v20  ;;  %v1845_v48 = vpop.f32.mrf.mxu0  ;;  %1358 = vst [vmem:[%s2602_s30 + $0xc0] sm:$0xff] %v1272_v22  ;;  %v1457_v25 = vadd.f32 %v2571_v4, %v1272_v22 }
 0x15f   : > { %v1957_v24 = vpop.f32.mrf.mxu1 }
 0x160   : > { %v1275_v26 = vadd.f32 %v1956_v2, %v1844_v59  ;;  %v1846_v27 = vpop.f32.mrf.mxu0  ;;  %1489 = vst [vmem:[%s2590_s26 + $0xc0] sm:$0xff] %v1457_v25 }
 0x161   : > { %v1847_v28 = vadd.f32 %v1846_v27, %v1845_v48  ;;  %v1958_v60 = vpop.f32.mrf.mxu1 }
 0x162   : > { %v1959_v3 = vadd.f32 %v1958_v60, %v1957_v24  ;;  %v1848_v54 = vpop.f32.mrf.mxu0  ;;  %1359 = vst [vmem:[%s2602_s30 + $0xc8] sm:$0xff] %v1275_v26  ;;  %v1458_v30 = vadd.f32 %v2574_v5, %v1275_v26 }
 0x163   : > { %v1960_v29 = vpop.f32.mrf.mxu1 }
 0x164   : > { %v1280_v49 = vadd.f32 %v1959_v3, %v1847_v28  ;;  %v1849_v31 = vpop.f32.mrf.mxu0  ;;  %1490 = vst [vmem:[%s2590_s26 + $0xc8] sm:$0xff] %v1458_v30 }
 0x165   : > { %v1850_v32 = vadd.f32 %v1849_v31, %v1848_v54  ;;  %v1961_v33 = vpop.f32.mrf.mxu1 }
 0x166   : > { %v1962_v4 = vadd.f32 %v1961_v33, %v1960_v29  ;;  %v1851_v61 = vpop.f32.mrf.mxu0  ;;  %1360 = vst [vmem:[%s2602_s30 + $0xd0] sm:$0xff] %v1280_v49  ;;  %v1459_v55 = vadd.f32 %v2577_v8, %v1280_v49 }
 0x167   : > { %v1963_v34 = vpop.f32.mrf.mxu1 }
 0x168   : > { %v1283_v35 = vadd.f32 %v1962_v4, %v1850_v32  ;;  %v1852_v36 = vpop.f32.mrf.mxu0  ;;  %1491 = vst [vmem:[%s2590_s26 + $0xd0] sm:$0xff] %v1459_v55 }
 0x169   : > { %v1853_v37 = vadd.f32 %v1852_v36, %v1851_v61  ;;  %v1964_v50 = vpop.f32.mrf.mxu1 }
 0x16a   : > { %v1965_v5 = vadd.f32 %v1964_v50, %v1963_v34  ;;  %v1854_v38 = vpop.f32.mrf.mxu0  ;;  %1361 = vst [vmem:[%s2602_s30 + $0xd8] sm:$0xff] %v1283_v35  ;;  %v1460_v39 = vadd.f32 %v2580_v9, %v1283_v35 }
 0x16b   : > { %v1966_v62 = vpop.f32.mrf.mxu1 }
 0x16c   : > { %v1288_v40 = vadd.f32 %v1965_v5, %v1853_v37  ;;  %v1855_v56 = vpop.f32.mrf.mxu0  ;;  %1492 = vst [vmem:[%s2590_s26 + $0xd8] sm:$0xff] %v1460_v39 }
 0x16d   : > { %v1856_v41 = vadd.f32 %v1855_v56, %v1854_v38  ;;  %v1967_v42 = vpop.f32.mrf.mxu1 }
 0x16e   : > { %v1968_v8 = vadd.f32 %v1967_v42, %v1966_v62  ;;  %v1857_v43 = vpop.f32.mrf.mxu0  ;;  %1362 = vst [vmem:[%s2602_s30 + $0xe0] sm:$0xff] %v1288_v40  ;;  %v1461_v63 = vadd.f32 %v2583_v10, %v1288_v40 }
 0x16f   : > { %v1969_v44 = vpop.f32.mrf.mxu1 }
 0x170   : > { %v1291_v51 = vadd.f32 %v1968_v8, %v1856_v41  ;;  %v1858_v45 = vpop.f32.mrf.mxu0  ;;  %1493 = vst [vmem:[%s2590_s26 + $0xe0] sm:$0xff] %v1461_v63 }
 0x171   : > { %v1859_v46 = vadd.f32 %v1858_v45, %v1857_v43  ;;  %v1970_v9 = vpop.f32.mrf.mxu1 }
 0x172   : > { %v1971_v57 = vadd.f32 %v1970_v9, %v1969_v44  ;;  %v1860_v6 = vpop.f32.mrf.mxu0  ;;  %1363 = vst [vmem:[%s2602_s30 + $0xe8] sm:$0xff] %v1291_v51  ;;  %v1462_v11 = vadd.f32 %v2593_v12, %v1291_v51 }
 0x173   : > { %v1972_v7 = vpop.f32.mrf.mxu1 }
 0x174   : > { %v1296_v0 = vadd.f32 %v1971_v57, %v1859_v46  ;;  %v1861_v10 = vpop.f32.mrf.mxu0  ;;  %1494 = vst [vmem:[%s2590_s26 + $0xe8] sm:$0xff] %v1462_v11 }
 0x175   : > { %v1862_v15 = vadd.f32 %v1861_v10, %v1860_v6  ;;  %v1973_v16 = vpop.f32.mrf.mxu1 }
 0x176   : > { %v1974_v52 = vadd.f32 %v1973_v16, %v1972_v7  ;;  %1364 = vst [vmem:[%s2602_s30 + $0xf0] sm:$0xff] %v1296_v0  ;;  %v1463_v47 = vadd.f32 %v2596_v13, %v1296_v0 }
 0x178   : > { %v1299_v58 = vadd.f32 %v1974_v52, %v1862_v15  ;;  %1495 = vst [vmem:[%s2590_s26 + $0xf0] sm:$0xff] %v1463_v47 }
 0x17a   : > { %1365 = vst [vmem:[%s2602_s30 + $0xf8] sm:$0xff] %v1299_v58  ;;  %v1464_v12 = vadd.f32 %v2599_v14, %v1299_v58 }
 0x17b   : > { %2174 = shalt.err (!%p2171_p5)
}
 0x17c   : > { %s2175_s11 = scalar_lea.hbm %s2698_s8, 4096  ;;  %s2179_s22 = scalar_lea.hbm %s2756_s3, 8192 }
 0x17d   : > { %p2176_p6 = scmp.ne.s32.totalorder %s2698_s8, %s2175_s11  ;;  %p2180_p10 = scmp.lt.s32.totalorder %s2698_s8, %s2756_s3 }
 0x17e   : > { %p2181_p11 = scmp.lt.s32.totalorder %s2179_s22, %s2175_s11 }
 0x17f   : > { %p2177_p7 = pnand %p2176_p6, %p2307_p4 }
 0x180   : > { %p2182_p12 = por %p2181_p11, %p2180_p10 }
 0x181   : > { %p2178_p9 = pneg %p2177_p7 }
 0x183   : > { %p2183_p13 = pnand %p2182_p12, %p2178_p9 }
 0x185   : > { %2186 = shalt.err (!%p2183_p13)
}
 0x186   : > { %s2240_s29 = smov 128   ;;  %s2241_s6 = smov 8   ;;  %1496 = vst [vmem:[%s2590_s26 + $0xf8] sm:$0xff] %v1464_v12 }
 0x187   : > { %1975 = dma.vmem_to_hbm [thread:$0]  (%p2307_p4), %s2700_s5, 4096, %s2698_s8, %s2707_s18, %s2240_s29, %s2240_s29, %s2241_s6  }
 0x188 PF: > { %p1981_p0 = scmp.ge.s32.totalorder %s2237_s20, 2  ;;  %s1535_s7 = sand.u32 1, %s2217_s15  }
 0x189   : > { %s1536_s9 = scalar_lea.sflag [#allocation3], %s1535_s7 }
 0x18a   : > { %p1978_p1 = pnand %p1981_p0, %p2314_p8 }
 0x18c   : > { %p1979_p2 = pneg %p1978_p1 }
 0x18e   : > { %2212 = dma.done.wait (%p1979_p2), %s1536_s9, 4096  }
 0x18f   : > { %2214 = vsyncadd (%p1979_p2), %s1536_s9, 4294963200  ;;  %s18_s20 = sadd.s32 1, %s2237_s20   ;;  %s2760_s15 = smov %s2221_s16 }
 0x190   : > { %p15_p3 = scmp.ge.s32.totalorder %s18_s20, 4   ;;  %s2761_s16 = smov %s2225_s17 }
 0x191   : > { %s2762_s17 = smov %s2320_s28  ;;  %s2763_s18 = smov %s2233_s19 }
 0x192   : > { %s2764_s19 = smov %s2766_s23  ;;  %17 = sbr.rel (!%p15_p3) target bundleno = 4 (0x4), region = 91 }
 0x197   :  { %1549 = vsyncpa [#allocation3], 1 }
 0x198   :  { %1551 = vsyncpa [#allocation3 + $0x1], 1 }

</bundles_post_ra>
